<compile_context>
chip_gen: v7x
topology: tpu7x:2x2x1
jax: 0.10.0
libtpu: 0.0.40
codegen_flags: <defaults>
</compile_context>

<pallas_src>
from functools import partial

import jax
import jax.numpy as jnp
from jax.experimental import pallas as pl
from jax.experimental.pallas import tpu as pltpu

_Q_TILE_CAP = 256
_K_TILE_CAP = 128   # keep the (tq, tk) f32 score tile <= ~32 vregs
_LANE = 128


def _default_tanh_dtype():
    """bf16 EUP exists on v6e / v7x; v5e and older only have an f32 path."""
    kind = jax.devices()[0].device_kind.lower()
    if ("v6" in kind) or ("v7" in kind) or ("7x" in kind):
        return jnp.bfloat16
    return jnp.float32


def _additive_attention_kernel(valid_ref,               # SMEM prefetch: (B,) int32
                               qp_ref,                  # (tq, H)   f32  queries @ W_q
                               kpT_ref,                 # (H, tk)   f32  (keys @ W_k)^T
                               v_ref,                   # (tk, Dvp)
                               wv_ref,                  # SMEM (H,) f32
                               o_ref,                   # (tq, Dvp)
                               m_ref, l_ref, acc_ref,   # VMEM scratch
                               *, tanh_dtype):
    b = pl.program_id(0)
    ki = pl.program_id(2)
    nk = pl.num_programs(2)

    tq, H = qp_ref.shape
    tk = kpT_ref.shape[1]

    valid = valid_ref[b]

    # --- init per (b, q-tile): reset the online-softmax state.  ki is the
    # innermost grid axis so this runs exactly once per output tile.
    @pl.when(ki == 0)
    def _init():
        m_ref[...] = jnp.full(m_ref.shape, -jnp.inf, jnp.float32)
        l_ref[...] = jnp.zeros(l_ref.shape, jnp.float32)
        acc_ref[...] = jnp.zeros(acc_ref.shape, jnp.float32)

    # --- skip fully-masked K tiles.  When valid == 0 every column is masked in
    # the reference too; process all tiles in that case so the softmax stays
    # uniform (and l >= 1, so finalize never divides by zero).
    @pl.when(jnp.logical_or(ki * tk < valid, valid == 0))
    def _tile():
        qp = qp_ref[...]        # (tq, H)
        kpT = kpT_ref[...]      # (H, tk) — lane-dense straight from DMA

        # additive scores, accumulated over H on the VPU/EUP.  No (tq, tk, H)
        # intermediate and no cross-lane reduce; wv[h] is a scalar from SMEM.
        scores = jnp.zeros((tq, tk), jnp.float32)
        for h in range(H):                               # H is a trace-time constant
            s = qp[:, h:h + 1] + kpT[h:h + 1, :]         # (tq, tk) outer sum
            t = jnp.tanh(s.astype(tanh_dtype)).astype(jnp.float32)
            scores = scores + wv_ref[h] * t

        # mask (matches the PyTorch masked_softmax value of -1e6)
        col = ki * tk + jax.lax.broadcasted_iota(jnp.int32, scores.shape, 1)
        scores = jnp.where(col < valid, scores, jnp.float32(-1000000.0))

        # online softmax update
        m_prev = m_ref[...]
        m_new = jnp.maximum(m_prev, jnp.max(scores, axis=-1, keepdims=True))
        alpha = jnp.exp(m_prev - m_new)
        p = jnp.exp(scores - m_new)                      # (tq, tk)
        l_ref[...] = alpha * l_ref[...] + jnp.sum(p, axis=-1, keepdims=True)
        acc_ref[...] = alpha * acc_ref[...] + jnp.dot(
            p, v_ref[...], preferred_element_type=jnp.float32)
        m_ref[...] = m_new

    # TODO(synk): nn.Dropout is identity in eval mode; training-mode dropout on
    # the attention weights is not implemented.

    @pl.when(ki == nk - 1)
    def _finalize():
        l = l_ref[...]
        inv = pl.reciprocal(l, approx=True)              # EUP vrcp
        inv = inv * (2.0 - l * inv)                      # one Newton step → ~f32 exact
        o_ref[...] = (acc_ref[...] * inv).astype(o_ref.dtype)


@partial(jax.jit, static_argnames=("tanh_dtype",))
def additive_attention(queries, keys, values, valid_lens, w_q, w_k, w_v,
                       *, tanh_dtype=jnp.float32):
    B, Q, Dq = queries.shape
    _, K, Dk = keys.shape
    _, _, Dv = values.shape
    H = w_q.shape[1]

    if valid_lens is None:
        valid_lens = jnp.full((B,), K, dtype=jnp.int32)
    valid_lens = valid_lens.astype(jnp.int32)
    # TODO(synk): per-query (B, Q) valid_lens (accepted by the PyTorch module) is
    # not supported here; only (B,) or None.

    # Precompute the projections once as plain XLA matmuls (cheap, MXU-friendly);
    # kpT is pre-transposed so K lands on the lane dimension from the DMA.
    qp = jnp.einsum("bqd,dh->bqh", queries, w_q).astype(jnp.float32)    # (B, Q, H)
    kpT = jnp.einsum("bkd,dh->bhk", keys, w_k).astype(jnp.float32)      # (B, H, K)
    wv_vec = w_v.reshape(-1).astype(jnp.float32)                        # (H,)

    # Lane-dense value / output layout: pad Dv up to a multiple of 128.
    Dvp = ((Dv + _LANE - 1) // _LANE) * _LANE
    values_p = values if Dvp == Dv else jnp.pad(
        values, ((0, 0), (0, 0), (0, Dvp - Dv)))

    tq = Q if Q <= _Q_TILE_CAP else _Q_TILE_CAP
    tk = K if K <= _K_TILE_CAP else _K_TILE_CAP
    assert Q % tq == 0 and K % tk == 0, "Q/K must be divisible by the tile caps"
    nq, nk = Q // tq, K // tk

    grid_spec = pltpu.PrefetchScalarGridSpec(
        num_scalar_prefetch=1,
        grid=(B, nq, nk),
        in_specs=[
            pl.BlockSpec((None, tq, H), lambda b, qi, ki, vl: (b, qi, 0)),     # qp
            pl.BlockSpec((None, H, tk), lambda b, qi, ki, vl: (b, 0, ki)),     # kpT
            pl.BlockSpec((None, tk, Dvp), lambda b, qi, ki, vl: (b, ki, 0)),   # values
            pl.BlockSpec(memory_space=pltpu.MemorySpace.SMEM),                 # w_v
        ],
        out_specs=pl.BlockSpec((None, tq, Dvp), lambda b, qi, ki, vl: (b, qi, 0)),
        scratch_shapes=[
            pltpu.VMEM((tq, 1), jnp.float32),     # running max m
            pltpu.VMEM((tq, 1), jnp.float32),     # running denom l
            pltpu.VMEM((tq, Dvp), jnp.float32),   # output accumulator
        ],
    )

    out = pl.pallas_call(
        partial(_additive_attention_kernel, tanh_dtype=tanh_dtype),
        out_shape=jax.ShapeDtypeStruct((B, Q, Dvp), values.dtype),
        grid_spec=grid_spec,
        compiler_params=pltpu.CompilerParams(
            dimension_semantics=("parallel", "parallel", "arbitrary")),
    )(valid_lens, qp, kpT, values_p, wv_vec)

    return out[..., :Dv]


def _reference(queries, keys, values, valid_lens, w_q, w_k, w_v):
    qp = queries @ w_q                                              # (B, Q, H)
    kp = keys @ w_k                                                 # (B, K, H)
    feats = jnp.tanh(qp[:, :, None, :] + kp[:, None, :, :])         # (B, Q, K, H)
    scores = jnp.einsum("bqkh,h->bqk", feats, w_v[:, 0])            # (B, Q, K)
    col = jnp.arange(scores.shape[-1])[None, None, :]
    mask = col < valid_lens[:, None, None]
    masked = jnp.where(mask, scores, -1000000.0)
    attn = jax.nn.softmax(masked, axis=-1)
    return jnp.einsum("bqk,bkd->bqd", attn, values)


if __name__ == "__main__":
    B, Q, K = 2, 4, 8          # batch, num queries, num key-value pairs
    Dq, Dk, Dv, H = 16, 8, 4, 32

    key = jax.random.PRNGKey(0)
    kq, kk, kv, kwq, kwk, kwv = jax.random.split(key, 6)

    queries = jax.random.normal(kq, (B, Q, Dq), dtype=jnp.float32)
    keys = jax.random.normal(kk, (B, K, Dk), dtype=jnp.float32)
    values = jax.random.normal(kv, (B, K, Dv), dtype=jnp.float32)
    valid_lens = jnp.array([3, 6], dtype=jnp.int32)

    # LazyLinear weights are (out, in) in PyTorch; we store (in, out).
    w_q = jax.random.normal(kwq, (Dq, H), dtype=jnp.float32) * 0.1
    w_k = jax.random.normal(kwk, (Dk, H), dtype=jnp.float32) * 0.1
    w_v = jax.random.normal(kwv, (H, 1), dtype=jnp.float32) * 0.1    # w_v: H -> 1

    ref = _reference(queries, keys, values, valid_lens, w_q, w_k, w_v)

    # 1) exact path (f32 tanh) — tight tolerance on every chip generation.
    out_f32 = additive_attention(queries, keys, values, valid_lens,
                                 w_q, w_k, w_v, tanh_dtype=jnp.float32)
    out_f32 = jax.block_until_ready(out_f32)
    assert out_f32.shape == (B, Q, Dv)
    assert jnp.allclose(out_f32, ref, atol=2e-5, rtol=2e-5), "mismatch vs reference (f32)"

    # 2) default path: bf16 tanh on v6e/v7x (f32 elsewhere) — looser tolerance.
    tanh_dtype = _default_tanh_dtype()
    out = additive_attention(queries, keys, values, valid_lens,
                             w_q, w_k, w_v, tanh_dtype=tanh_dtype)
    out = jax.block_until_ready(out)
    tol = 2e-5 if tanh_dtype == jnp.float32 else 5e-2
    assert out.shape == (B, Q, Dv)
    assert jnp.allclose(out, ref, atol=tol, rtol=tol), "mismatch vs reference (default)"

    print("KERNEL_OK")
</pallas_src>

<mosaic_0001>
module attributes {stable_mosaic.version = 11 : i64} {
  func.func @_additive_attention_kernel(%arg0: i32, %arg1: i32, %arg2: i32, %arg3: memref<2xi32, #tpu.memory_space<smem>>, %arg4: memref<1x4x32xf32, #tpu.memory_space<vmem>>, %arg5: memref<1x32x8xf32, #tpu.memory_space<vmem>>, %arg6: memref<1x8x128xf32, #tpu.memory_space<vmem>>, %arg7: memref<32xf32, #tpu.memory_space<smem>>, %arg8: memref<1x4x128xf32, #tpu.memory_space<vmem>>, %arg9: memref<4x1xf32, #tpu.memory_space<vmem>>, %arg10: memref<4x1xf32, #tpu.memory_space<vmem>>, %arg11: memref<4x128xf32, #tpu.memory_space<vmem>>) attributes {dimension_semantics = [#tpu.dimension_semantics<parallel>, #tpu.dimension_semantics<parallel>, #tpu.dimension_semantics<arbitrary>], iteration_bounds = array<i64: 2, 1, 1>, scalar_prefetch = 1 : i64, scratch_operands = 3 : i64, tpu.core_type = #tpu.core_type<tc>, window_params = [{transform_indices = @transform_0, window_bounds = array<i64: 1, 4, 32>}, {transform_indices = @transform_1, window_bounds = array<i64: 1, 32, 8>}, {transform_indices = @transform_2, window_bounds = array<i64: 1, 8, 128>}, {transform_indices = @transform_3, window_bounds = array<i64: 32>}, {transform_indices = @transform_4, window_bounds = array<i64: 1, 4, 128>}]} {
    %0 = arith.index_cast %arg0 : i32 to index
    %1 = memref.load %arg3[%0] : memref<2xi32, #tpu.memory_space<smem>>
    %c0_i32 = arith.constant 0 : i32
    %2 = arith.cmpi eq, %arg2, %c0_i32 : i32
    %3 = arith.extui %2 : i1 to i32
    %c0_i32_0 = arith.constant 0 : i32
    %4 = arith.cmpi ne, %3, %c0_i32_0 : i32
    scf.if %4 {
      %cst = arith.constant 0xFF800000 : f32
      %14 = vector.broadcast %cst : f32 to vector<4x1xf32>
      %c0 = arith.constant 0 : index
      %c0_5 = arith.constant 0 : index
      %15 = vector.load %arg9[%c0, %c0_5] : memref<4x1xf32, #tpu.memory_space<vmem>>, vector<4x1xf32>
      tpu.vector_store %arg9[%c0, %c0_5], %14 {strides = array<i32>} : memref<4x1xf32, #tpu.memory_space<vmem>>, vector<4x1xf32>,
      %cst_6 = arith.constant 0.000000e+00 : f32
      %16 = vector.broadcast %cst_6 : f32 to vector<4x1xf32>
      %c0_7 = arith.constant 0 : index
      %c0_8 = arith.constant 0 : index
      %17 = vector.load %arg10[%c0_7, %c0_8] : memref<4x1xf32, #tpu.memory_space<vmem>>, vector<4x1xf32>
      tpu.vector_store %arg10[%c0_7, %c0_8], %16 {strides = array<i32>} : memref<4x1xf32, #tpu.memory_space<vmem>>, vector<4x1xf32>,
      %cst_9 = arith.constant 0.000000e+00 : f32
      %18 = vector.broadcast %cst_9 : f32 to vector<4x128xf32>
      %c0_10 = arith.constant 0 : index
      %c0_11 = arith.constant 0 : index
      %19 = vector.load %arg11[%c0_10, %c0_11] : memref<4x128xf32, #tpu.memory_space<vmem>>, vector<4x128xf32>
      tpu.vector_store %arg11[%c0_10, %c0_11], %18 {strides = array<i32>} : memref<4x128xf32, #tpu.memory_space<vmem>>, vector<4x128xf32>,
    } else {
    }
    %c8_i32 = arith.constant 8 : i32
    %5 = arith.muli %arg2, %c8_i32 : i32
    %6 = arith.cmpi slt, %5, %1 : i32
    %c0_i32_1 = arith.constant 0 : i32
    %7 = arith.cmpi eq, %1, %c0_i32_1 : i32
    %8 = arith.ori %6, %7 : i1
    %9 = arith.extui %8 : i1 to i32
    %c0_i32_2 = arith.constant 0 : i32
    %10 = arith.cmpi ne, %9, %c0_i32_2 : i32
    scf.if %10 {
      %c0 = arith.constant 0 : index
      %c0_5 = arith.constant 0 : index
      %c0_6 = arith.constant 0 : index
      %14 = vector.load %arg4[%c0, %c0_5, %c0_6] : memref<1x4x32xf32, #tpu.memory_space<vmem>>, vector<1x4x32xf32>
      %15 = vector.shape_cast %14 : vector<1x4x32xf32> to vector<4x32xf32>
      %c0_7 = arith.constant 0 : index
      %c0_8 = arith.constant 0 : index
      %c0_9 = arith.constant 0 : index
      %16 = vector.load %arg5[%c0_7, %c0_8, %c0_9] : memref<1x32x8xf32, #tpu.memory_space<vmem>>, vector<1x32x8xf32>
      %17 = vector.shape_cast %16 : vector<1x32x8xf32> to vector<32x8xf32>
      %cst = arith.constant 0.000000e+00 : f32
      %18 = vector.broadcast %cst : f32 to vector<4x8xf32>
      %19 = vector.extract_strided_slice %15 {offsets = [0, 0], sizes = [4, 1], strides = [1, 1]} : vector<4x32xf32> to vector<4x1xf32>
      %20 = vector.extract_strided_slice %17 {offsets = [0, 0], sizes = [1, 8], strides = [1, 1]} : vector<32x8xf32> to vector<1x8xf32>
      %21 = vector.broadcast %19 : vector<4x1xf32> to vector<4x8xf32>
      %22 = vector.broadcast %20 : vector<1x8xf32> to vector<4x8xf32>
      %23 = arith.addf %21, %22 : vector<4x8xf32>
      %24 = math.tanh %23 : vector<4x8xf32>
      %c0_10 = arith.constant 0 : index
      %25 = memref.load %arg7[%c0_10] : memref<32xf32, #tpu.memory_space<smem>>
      %26 = vector.broadcast %25 : f32 to vector<4x8xf32>
      %27 = arith.mulf %26, %24 : vector<4x8xf32>
      %28 = arith.addf %18, %27 : vector<4x8xf32>
      %29 = vector.extract_strided_slice %15 {offsets = [0, 1], sizes = [4, 1], strides = [1, 1]} : vector<4x32xf32> to vector<4x1xf32>
      %30 = vector.extract_strided_slice %17 {offsets = [1, 0], sizes = [1, 8], strides = [1, 1]} : vector<32x8xf32> to vector<1x8xf32>
      %31 = vector.broadcast %29 : vector<4x1xf32> to vector<4x8xf32>
      %32 = vector.broadcast %30 : vector<1x8xf32> to vector<4x8xf32>
      %33 = arith.addf %31, %32 : vector<4x8xf32>
      %34 = math.tanh %33 : vector<4x8xf32>
      %c1 = arith.constant 1 : index
      %35 = memref.load %arg7[%c1] : memref<32xf32, #tpu.memory_space<smem>>
      %36 = vector.broadcast %35 : f32 to vector<4x8xf32>
      %37 = arith.mulf %36, %34 : vector<4x8xf32>
      %38 = arith.addf %28, %37 : vector<4x8xf32>
      %39 = vector.extract_strided_slice %15 {offsets = [0, 2], sizes = [4, 1], strides = [1, 1]} : vector<4x32xf32> to vector<4x1xf32>
      %40 = vector.extract_strided_slice %17 {offsets = [2, 0], sizes = [1, 8], strides = [1, 1]} : vector<32x8xf32> to vector<1x8xf32>
      %41 = vector.broadcast %39 : vector<4x1xf32> to vector<4x8xf32>
      %42 = vector.broadcast %40 : vector<1x8xf32> to vector<4x8xf32>
      %43 = arith.addf %41, %42 : vector<4x8xf32>
      %44 = math.tanh %43 : vector<4x8xf32>
      %c2 = arith.constant 2 : index
      %45 = memref.load %arg7[%c2] : memref<32xf32, #tpu.memory_space<smem>>
      %46 = vector.broadcast %45 : f32 to vector<4x8xf32>
      %47 = arith.mulf %46, %44 : vector<4x8xf32>
      %48 = arith.addf %38, %47 : vector<4x8xf32>
      %49 = vector.extract_strided_slice %15 {offsets = [0, 3], sizes = [4, 1], strides = [1, 1]} : vector<4x32xf32> to vector<4x1xf32>
      %50 = vector.extract_strided_slice %17 {offsets = [3, 0], sizes = [1, 8], strides = [1, 1]} : vector<32x8xf32> to vector<1x8xf32>
      %51 = vector.broadcast %49 : vector<4x1xf32> to vector<4x8xf32>
      %52 = vector.broadcast %50 : vector<1x8xf32> to vector<4x8xf32>
      %53 = arith.addf %51, %52 : vector<4x8xf32>
      %54 = math.tanh %53 : vector<4x8xf32>
      %c3 = arith.constant 3 : index
      %55 = memref.load %arg7[%c3] : memref<32xf32, #tpu.memory_space<smem>>
      %56 = vector.broadcast %55 : f32 to vector<4x8xf32>
      %57 = arith.mulf %56, %54 : vector<4x8xf32>
      %58 = arith.addf %48, %57 : vector<4x8xf32>
      %59 = vector.extract_strided_slice %15 {offsets = [0, 4], sizes = [4, 1], strides = [1, 1]} : vector<4x32xf32> to vector<4x1xf32>
      %60 = vector.extract_strided_slice %17 {offsets = [4, 0], sizes = [1, 8], strides = [1, 1]} : vector<32x8xf32> to vector<1x8xf32>
      %61 = vector.broadcast %59 : vector<4x1xf32> to vector<4x8xf32>
      %62 = vector.broadcast %60 : vector<1x8xf32> to vector<4x8xf32>
      %63 = arith.addf %61, %62 : vector<4x8xf32>
      %64 = math.tanh %63 : vector<4x8xf32>
      %c4 = arith.constant 4 : index
      %65 = memref.load %arg7[%c4] : memref<32xf32, #tpu.memory_space<smem>>
      %66 = vector.broadcast %65 : f32 to vector<4x8xf32>
      %67 = arith.mulf %66, %64 : vector<4x8xf32>
      %68 = arith.addf %58, %67 : vector<4x8xf32>
      %69 = vector.extract_strided_slice %15 {offsets = [0, 5], sizes = [4, 1], strides = [1, 1]} : vector<4x32xf32> to vector<4x1xf32>
      %70 = vector.extract_strided_slice %17 {offsets = [5, 0], sizes = [1, 8], strides = [1, 1]} : vector<32x8xf32> to vector<1x8xf32>
      %71 = vector.broadcast %69 : vector<4x1xf32> to vector<4x8xf32>
      %72 = vector.broadcast %70 : vector<1x8xf32> to vector<4x8xf32>
      %73 = arith.addf %71, %72 : vector<4x8xf32>
      %74 = math.tanh %73 : vector<4x8xf32>
      %c5 = arith.constant 5 : index
      %75 = memref.load %arg7[%c5] : memref<32xf32, #tpu.memory_space<smem>>
      %76 = vector.broadcast %75 : f32 to vector<4x8xf32>
      %77 = arith.mulf %76, %74 : vector<4x8xf32>
      %78 = arith.addf %68, %77 : vector<4x8xf32>
      %79 = vector.extract_strided_slice %15 {offsets = [0, 6], sizes = [4, 1], strides = [1, 1]} : vector<4x32xf32> to vector<4x1xf32>
      %80 = vector.extract_strided_slice %17 {offsets = [6, 0], sizes = [1, 8], strides = [1, 1]} : vector<32x8xf32> to vector<1x8xf32>
      %81 = vector.broadcast %79 : vector<4x1xf32> to vector<4x8xf32>
      %82 = vector.broadcast %80 : vector<1x8xf32> to vector<4x8xf32>
      %83 = arith.addf %81, %82 : vector<4x8xf32>
      %84 = math.tanh %83 : vector<4x8xf32>
      %c6 = arith.constant 6 : index
      %85 = memref.load %arg7[%c6] : memref<32xf32, #tpu.memory_space<smem>>
      %86 = vector.broadcast %85 : f32 to vector<4x8xf32>
      %87 = arith.mulf %86, %84 : vector<4x8xf32>
      %88 = arith.addf %78, %87 : vector<4x8xf32>
      %89 = vector.extract_strided_slice %15 {offsets = [0, 7], sizes = [4, 1], strides = [1, 1]} : vector<4x32xf32> to vector<4x1xf32>
      %90 = vector.extract_strided_slice %17 {offsets = [7, 0], sizes = [1, 8], strides = [1, 1]} : vector<32x8xf32> to vector<1x8xf32>
      %91 = vector.broadcast %89 : vector<4x1xf32> to vector<4x8xf32>
      %92 = vector.broadcast %90 : vector<1x8xf32> to vector<4x8xf32>
      %93 = arith.addf %91, %92 : vector<4x8xf32>
      %94 = math.tanh %93 : vector<4x8xf32>
      %c7 = arith.constant 7 : index
      %95 = memref.load %arg7[%c7] : memref<32xf32, #tpu.memory_space<smem>>
      %96 = vector.broadcast %95 : f32 to vector<4x8xf32>
      %97 = arith.mulf %96, %94 : vector<4x8xf32>
      %98 = arith.addf %88, %97 : vector<4x8xf32>
      %99 = vector.extract_strided_slice %15 {offsets = [0, 8], sizes = [4, 1], strides = [1, 1]} : vector<4x32xf32> to vector<4x1xf32>
      %100 = vector.extract_strided_slice %17 {offsets = [8, 0], sizes = [1, 8], strides = [1, 1]} : vector<32x8xf32> to vector<1x8xf32>
      %101 = vector.broadcast %99 : vector<4x1xf32> to vector<4x8xf32>
      %102 = vector.broadcast %100 : vector<1x8xf32> to vector<4x8xf32>
      %103 = arith.addf %101, %102 : vector<4x8xf32>
      %104 = math.tanh %103 : vector<4x8xf32>
      %c8 = arith.constant 8 : index
      %105 = memref.load %arg7[%c8] : memref<32xf32, #tpu.memory_space<smem>>
      %106 = vector.broadcast %105 : f32 to vector<4x8xf32>
      %107 = arith.mulf %106, %104 : vector<4x8xf32>
      %108 = arith.addf %98, %107 : vector<4x8xf32>
      %109 = vector.extract_strided_slice %15 {offsets = [0, 9], sizes = [4, 1], strides = [1, 1]} : vector<4x32xf32> to vector<4x1xf32>
      %110 = vector.extract_strided_slice %17 {offsets = [9, 0], sizes = [1, 8], strides = [1, 1]} : vector<32x8xf32> to vector<1x8xf32>
      %111 = vector.broadcast %109 : vector<4x1xf32> to vector<4x8xf32>
      %112 = vector.broadcast %110 : vector<1x8xf32> to vector<4x8xf32>
      %113 = arith.addf %111, %112 : vector<4x8xf32>
      %114 = math.tanh %113 : vector<4x8xf32>
      %c9 = arith.constant 9 : index
      %115 = memref.load %arg7[%c9] : memref<32xf32, #tpu.memory_space<smem>>
      %116 = vector.broadcast %115 : f32 to vector<4x8xf32>
      %117 = arith.mulf %116, %114 : vector<4x8xf32>
      %118 = arith.addf %108, %117 : vector<4x8xf32>
      %119 = vector.extract_strided_slice %15 {offsets = [0, 10], sizes = [4, 1], strides = [1, 1]} : vector<4x32xf32> to vector<4x1xf32>
      %120 = vector.extract_strided_slice %17 {offsets = [10, 0], sizes = [1, 8], strides = [1, 1]} : vector<32x8xf32> to vector<1x8xf32>
      %121 = vector.broadcast %119 : vector<4x1xf32> to vector<4x8xf32>
      %122 = vector.broadcast %120 : vector<1x8xf32> to vector<4x8xf32>
      %123 = arith.addf %121, %122 : vector<4x8xf32>
      %124 = math.tanh %123 : vector<4x8xf32>
      %c10 = arith.constant 10 : index
      %125 = memref.load %arg7[%c10] : memref<32xf32, #tpu.memory_space<smem>>
      %126 = vector.broadcast %125 : f32 to vector<4x8xf32>
      %127 = arith.mulf %126, %124 : vector<4x8xf32>
      %128 = arith.addf %118, %127 : vector<4x8xf32>
      %129 = vector.extract_strided_slice %15 {offsets = [0, 11], sizes = [4, 1], strides = [1, 1]} : vector<4x32xf32> to vector<4x1xf32>
      %130 = vector.extract_strided_slice %17 {offsets = [11, 0], sizes = [1, 8], strides = [1, 1]} : vector<32x8xf32> to vector<1x8xf32>
      %131 = vector.broadcast %129 : vector<4x1xf32> to vector<4x8xf32>
      %132 = vector.broadcast %130 : vector<1x8xf32> to vector<4x8xf32>
      %133 = arith.addf %131, %132 : vector<4x8xf32>
      %134 = math.tanh %133 : vector<4x8xf32>
      %c11 = arith.constant 11 : index
      %135 = memref.load %arg7[%c11] : memref<32xf32, #tpu.memory_space<smem>>
      %136 = vector.broadcast %135 : f32 to vector<4x8xf32>
      %137 = arith.mulf %136, %134 : vector<4x8xf32>
      %138 = arith.addf %128, %137 : vector<4x8xf32>
      %139 = vector.extract_strided_slice %15 {offsets = [0, 12], sizes = [4, 1], strides = [1, 1]} : vector<4x32xf32> to vector<4x1xf32>
      %140 = vector.extract_strided_slice %17 {offsets = [12, 0], sizes = [1, 8], strides = [1, 1]} : vector<32x8xf32> to vector<1x8xf32>
      %141 = vector.broadcast %139 : vector<4x1xf32> to vector<4x8xf32>
      %142 = vector.broadcast %140 : vector<1x8xf32> to vector<4x8xf32>
      %143 = arith.addf %141, %142 : vector<4x8xf32>
      %144 = math.tanh %143 : vector<4x8xf32>
      %c12 = arith.constant 12 : index
      %145 = memref.load %arg7[%c12] : memref<32xf32, #tpu.memory_space<smem>>
      %146 = vector.broadcast %145 : f32 to vector<4x8xf32>
      %147 = arith.mulf %146, %144 : vector<4x8xf32>
      %148 = arith.addf %138, %147 : vector<4x8xf32>
      %149 = vector.extract_strided_slice %15 {offsets = [0, 13], sizes = [4, 1], strides = [1, 1]} : vector<4x32xf32> to vector<4x1xf32>
      %150 = vector.extract_strided_slice %17 {offsets = [13, 0], sizes = [1, 8], strides = [1, 1]} : vector<32x8xf32> to vector<1x8xf32>
      %151 = vector.broadcast %149 : vector<4x1xf32> to vector<4x8xf32>
      %152 = vector.broadcast %150 : vector<1x8xf32> to vector<4x8xf32>
      %153 = arith.addf %151, %152 : vector<4x8xf32>
      %154 = math.tanh %153 : vector<4x8xf32>
      %c13 = arith.constant 13 : index
      %155 = memref.load %arg7[%c13] : memref<32xf32, #tpu.memory_space<smem>>
      %156 = vector.broadcast %155 : f32 to vector<4x8xf32>
      %157 = arith.mulf %156, %154 : vector<4x8xf32>
      %158 = arith.addf %148, %157 : vector<4x8xf32>
      %159 = vector.extract_strided_slice %15 {offsets = [0, 14], sizes = [4, 1], strides = [1, 1]} : vector<4x32xf32> to vector<4x1xf32>
      %160 = vector.extract_strided_slice %17 {offsets = [14, 0], sizes = [1, 8], strides = [1, 1]} : vector<32x8xf32> to vector<1x8xf32>
      %161 = vector.broadcast %159 : vector<4x1xf32> to vector<4x8xf32>
      %162 = vector.broadcast %160 : vector<1x8xf32> to vector<4x8xf32>
      %163 = arith.addf %161, %162 : vector<4x8xf32>
      %164 = math.tanh %163 : vector<4x8xf32>
      %c14 = arith.constant 14 : index
      %165 = memref.load %arg7[%c14] : memref<32xf32, #tpu.memory_space<smem>>
      %166 = vector.broadcast %165 : f32 to vector<4x8xf32>
      %167 = arith.mulf %166, %164 : vector<4x8xf32>
      %168 = arith.addf %158, %167 : vector<4x8xf32>
      %169 = vector.extract_strided_slice %15 {offsets = [0, 15], sizes = [4, 1], strides = [1, 1]} : vector<4x32xf32> to vector<4x1xf32>
      %170 = vector.extract_strided_slice %17 {offsets = [15, 0], sizes = [1, 8], strides = [1, 1]} : vector<32x8xf32> to vector<1x8xf32>
      %171 = vector.broadcast %169 : vector<4x1xf32> to vector<4x8xf32>
      %172 = vector.broadcast %170 : vector<1x8xf32> to vector<4x8xf32>
      %173 = arith.addf %171, %172 : vector<4x8xf32>
      %174 = math.tanh %173 : vector<4x8xf32>
      %c15 = arith.constant 15 : index
      %175 = memref.load %arg7[%c15] : memref<32xf32, #tpu.memory_space<smem>>
      %176 = vector.broadcast %175 : f32 to vector<4x8xf32>
      %177 = arith.mulf %176, %174 : vector<4x8xf32>
      %178 = arith.addf %168, %177 : vector<4x8xf32>
      %179 = vector.extract_strided_slice %15 {offsets = [0, 16], sizes = [4, 1], strides = [1, 1]} : vector<4x32xf32> to vector<4x1xf32>
      %180 = vector.extract_strided_slice %17 {offsets = [16, 0], sizes = [1, 8], strides = [1, 1]} : vector<32x8xf32> to vector<1x8xf32>
      %181 = vector.broadcast %179 : vector<4x1xf32> to vector<4x8xf32>
      %182 = vector.broadcast %180 : vector<1x8xf32> to vector<4x8xf32>
      %183 = arith.addf %181, %182 : vector<4x8xf32>
      %184 = math.tanh %183 : vector<4x8xf32>
      %c16 = arith.constant 16 : index
      %185 = memref.load %arg7[%c16] : memref<32xf32, #tpu.memory_space<smem>>
      %186 = vector.broadcast %185 : f32 to vector<4x8xf32>
      %187 = arith.mulf %186, %184 : vector<4x8xf32>
      %188 = arith.addf %178, %187 : vector<4x8xf32>
      %189 = vector.extract_strided_slice %15 {offsets = [0, 17], sizes = [4, 1], strides = [1, 1]} : vector<4x32xf32> to vector<4x1xf32>
      %190 = vector.extract_strided_slice %17 {offsets = [17, 0], sizes = [1, 8], strides = [1, 1]} : vector<32x8xf32> to vector<1x8xf32>
      %191 = vector.broadcast %189 : vector<4x1xf32> to vector<4x8xf32>
      %192 = vector.broadcast %190 : vector<1x8xf32> to vector<4x8xf32>
      %193 = arith.addf %191, %192 : vector<4x8xf32>
      %194 = math.tanh %193 : vector<4x8xf32>
      %c17 = arith.constant 17 : index
      %195 = memref.load %arg7[%c17] : memref<32xf32, #tpu.memory_space<smem>>
      %196 = vector.broadcast %195 : f32 to vector<4x8xf32>
      %197 = arith.mulf %196, %194 : vector<4x8xf32>
      %198 = arith.addf %188, %197 : vector<4x8xf32>
      %199 = vector.extract_strided_slice %15 {offsets = [0, 18], sizes = [4, 1], strides = [1, 1]} : vector<4x32xf32> to vector<4x1xf32>
      %200 = vector.extract_strided_slice %17 {offsets = [18, 0], sizes = [1, 8], strides = [1, 1]} : vector<32x8xf32> to vector<1x8xf32>
      %201 = vector.broadcast %199 : vector<4x1xf32> to vector<4x8xf32>
      %202 = vector.broadcast %200 : vector<1x8xf32> to vector<4x8xf32>
      %203 = arith.addf %201, %202 : vector<4x8xf32>
      %204 = math.tanh %203 : vector<4x8xf32>
      %c18 = arith.constant 18 : index
      %205 = memref.load %arg7[%c18] : memref<32xf32, #tpu.memory_space<smem>>
      %206 = vector.broadcast %205 : f32 to vector<4x8xf32>
      %207 = arith.mulf %206, %204 : vector<4x8xf32>
      %208 = arith.addf %198, %207 : vector<4x8xf32>
      %209 = vector.extract_strided_slice %15 {offsets = [0, 19], sizes = [4, 1], strides = [1, 1]} : vector<4x32xf32> to vector<4x1xf32>
      %210 = vector.extract_strided_slice %17 {offsets = [19, 0], sizes = [1, 8], strides = [1, 1]} : vector<32x8xf32> to vector<1x8xf32>
      %211 = vector.broadcast %209 : vector<4x1xf32> to vector<4x8xf32>
      %212 = vector.broadcast %210 : vector<1x8xf32> to vector<4x8xf32>
      %213 = arith.addf %211, %212 : vector<4x8xf32>
      %214 = math.tanh %213 : vector<4x8xf32>
      %c19 = arith.constant 19 : index
      %215 = memref.load %arg7[%c19] : memref<32xf32, #tpu.memory_space<smem>>
      %216 = vector.broadcast %215 : f32 to vector<4x8xf32>
      %217 = arith.mulf %216, %214 : vector<4x8xf32>
      %218 = arith.addf %208, %217 : vector<4x8xf32>
      %219 = vector.extract_strided_slice %15 {offsets = [0, 20], sizes = [4, 1], strides = [1, 1]} : vector<4x32xf32> to vector<4x1xf32>
      %220 = vector.extract_strided_slice %17 {offsets = [20, 0], sizes = [1, 8], strides = [1, 1]} : vector<32x8xf32> to vector<1x8xf32>
      %221 = vector.broadcast %219 : vector<4x1xf32> to vector<4x8xf32>
      %222 = vector.broadcast %220 : vector<1x8xf32> to vector<4x8xf32>
      %223 = arith.addf %221, %222 : vector<4x8xf32>
      %224 = math.tanh %223 : vector<4x8xf32>
      %c20 = arith.constant 20 : index
      %225 = memref.load %arg7[%c20] : memref<32xf32, #tpu.memory_space<smem>>
      %226 = vector.broadcast %225 : f32 to vector<4x8xf32>
      %227 = arith.mulf %226, %224 : vector<4x8xf32>
      %228 = arith.addf %218, %227 : vector<4x8xf32>
      %229 = vector.extract_strided_slice %15 {offsets = [0, 21], sizes = [4, 1], strides = [1, 1]} : vector<4x32xf32> to vector<4x1xf32>
      %230 = vector.extract_strided_slice %17 {offsets = [21, 0], sizes = [1, 8], strides = [1, 1]} : vector<32x8xf32> to vector<1x8xf32>
      %231 = vector.broadcast %229 : vector<4x1xf32> to vector<4x8xf32>
      %232 = vector.broadcast %230 : vector<1x8xf32> to vector<4x8xf32>
      %233 = arith.addf %231, %232 : vector<4x8xf32>
      %234 = math.tanh %233 : vector<4x8xf32>
      %c21 = arith.constant 21 : index
      %235 = memref.load %arg7[%c21] : memref<32xf32, #tpu.memory_space<smem>>
      %236 = vector.broadcast %235 : f32 to vector<4x8xf32>
      %237 = arith.mulf %236, %234 : vector<4x8xf32>
      %238 = arith.addf %228, %237 : vector<4x8xf32>
      %239 = vector.extract_strided_slice %15 {offsets = [0, 22], sizes = [4, 1], strides = [1, 1]} : vector<4x32xf32> to vector<4x1xf32>
      %240 = vector.extract_strided_slice %17 {offsets = [22, 0], sizes = [1, 8], strides = [1, 1]} : vector<32x8xf32> to vector<1x8xf32>
      %241 = vector.broadcast %239 : vector<4x1xf32> to vector<4x8xf32>
      %242 = vector.broadcast %240 : vector<1x8xf32> to vector<4x8xf32>
      %243 = arith.addf %241, %242 : vector<4x8xf32>
      %244 = math.tanh %243 : vector<4x8xf32>
      %c22 = arith.constant 22 : index
      %245 = memref.load %arg7[%c22] : memref<32xf32, #tpu.memory_space<smem>>
      %246 = vector.broadcast %245 : f32 to vector<4x8xf32>
      %247 = arith.mulf %246, %244 : vector<4x8xf32>
      %248 = arith.addf %238, %247 : vector<4x8xf32>
      %249 = vector.extract_strided_slice %15 {offsets = [0, 23], sizes = [4, 1], strides = [1, 1]} : vector<4x32xf32> to vector<4x1xf32>
      %250 = vector.extract_strided_slice %17 {offsets = [23, 0], sizes = [1, 8], strides = [1, 1]} : vector<32x8xf32> to vector<1x8xf32>
      %251 = vector.broadcast %249 : vector<4x1xf32> to vector<4x8xf32>
      %252 = vector.broadcast %250 : vector<1x8xf32> to vector<4x8xf32>
      %253 = arith.addf %251, %252 : vector<4x8xf32>
      %254 = math.tanh %253 : vector<4x8xf32>
      %c23 = arith.constant 23 : index
      %255 = memref.load %arg7[%c23] : memref<32xf32, #tpu.memory_space<smem>>
      %256 = vector.broadcast %255 : f32 to vector<4x8xf32>
      %257 = arith.mulf %256, %254 : vector<4x8xf32>
      %258 = arith.addf %248, %257 : vector<4x8xf32>
      %259 = vector.extract_strided_slice %15 {offsets = [0, 24], sizes = [4, 1], strides = [1, 1]} : vector<4x32xf32> to vector<4x1xf32>
      %260 = vector.extract_strided_slice %17 {offsets = [24, 0], sizes = [1, 8], strides = [1, 1]} : vector<32x8xf32> to vector<1x8xf32>
      %261 = vector.broadcast %259 : vector<4x1xf32> to vector<4x8xf32>
      %262 = vector.broadcast %260 : vector<1x8xf32> to vector<4x8xf32>
      %263 = arith.addf %261, %262 : vector<4x8xf32>
      %264 = math.tanh %263 : vector<4x8xf32>
      %c24 = arith.constant 24 : index
      %265 = memref.load %arg7[%c24] : memref<32xf32, #tpu.memory_space<smem>>
      %266 = vector.broadcast %265 : f32 to vector<4x8xf32>
      %267 = arith.mulf %266, %264 : vector<4x8xf32>
      %268 = arith.addf %258, %267 : vector<4x8xf32>
      %269 = vector.extract_strided_slice %15 {offsets = [0, 25], sizes = [4, 1], strides = [1, 1]} : vector<4x32xf32> to vector<4x1xf32>
      %270 = vector.extract_strided_slice %17 {offsets = [25, 0], sizes = [1, 8], strides = [1, 1]} : vector<32x8xf32> to vector<1x8xf32>
      %271 = vector.broadcast %269 : vector<4x1xf32> to vector<4x8xf32>
      %272 = vector.broadcast %270 : vector<1x8xf32> to vector<4x8xf32>
      %273 = arith.addf %271, %272 : vector<4x8xf32>
      %274 = math.tanh %273 : vector<4x8xf32>
      %c25 = arith.constant 25 : index
      %275 = memref.load %arg7[%c25] : memref<32xf32, #tpu.memory_space<smem>>
      %276 = vector.broadcast %275 : f32 to vector<4x8xf32>
      %277 = arith.mulf %276, %274 : vector<4x8xf32>
      %278 = arith.addf %268, %277 : vector<4x8xf32>
      %279 = vector.extract_strided_slice %15 {offsets = [0, 26], sizes = [4, 1], strides = [1, 1]} : vector<4x32xf32> to vector<4x1xf32>
      %280 = vector.extract_strided_slice %17 {offsets = [26, 0], sizes = [1, 8], strides = [1, 1]} : vector<32x8xf32> to vector<1x8xf32>
      %281 = vector.broadcast %279 : vector<4x1xf32> to vector<4x8xf32>
      %282 = vector.broadcast %280 : vector<1x8xf32> to vector<4x8xf32>
      %283 = arith.addf %281, %282 : vector<4x8xf32>
      %284 = math.tanh %283 : vector<4x8xf32>
      %c26 = arith.constant 26 : index
      %285 = memref.load %arg7[%c26] : memref<32xf32, #tpu.memory_space<smem>>
      %286 = vector.broadcast %285 : f32 to vector<4x8xf32>
      %287 = arith.mulf %286, %284 : vector<4x8xf32>
      %288 = arith.addf %278, %287 : vector<4x8xf32>
      %289 = vector.extract_strided_slice %15 {offsets = [0, 27], sizes = [4, 1], strides = [1, 1]} : vector<4x32xf32> to vector<4x1xf32>
      %290 = vector.extract_strided_slice %17 {offsets = [27, 0], sizes = [1, 8], strides = [1, 1]} : vector<32x8xf32> to vector<1x8xf32>
      %291 = vector.broadcast %289 : vector<4x1xf32> to vector<4x8xf32>
      %292 = vector.broadcast %290 : vector<1x8xf32> to vector<4x8xf32>
      %293 = arith.addf %291, %292 : vector<4x8xf32>
      %294 = math.tanh %293 : vector<4x8xf32>
      %c27 = arith.constant 27 : index
      %295 = memref.load %arg7[%c27] : memref<32xf32, #tpu.memory_space<smem>>
      %296 = vector.broadcast %295 : f32 to vector<4x8xf32>
      %297 = arith.mulf %296, %294 : vector<4x8xf32>
      %298 = arith.addf %288, %297 : vector<4x8xf32>
      %299 = vector.extract_strided_slice %15 {offsets = [0, 28], sizes = [4, 1], strides = [1, 1]} : vector<4x32xf32> to vector<4x1xf32>
      %300 = vector.extract_strided_slice %17 {offsets = [28, 0], sizes = [1, 8], strides = [1, 1]} : vector<32x8xf32> to vector<1x8xf32>
      %301 = vector.broadcast %299 : vector<4x1xf32> to vector<4x8xf32>
      %302 = vector.broadcast %300 : vector<1x8xf32> to vector<4x8xf32>
      %303 = arith.addf %301, %302 : vector<4x8xf32>
      %304 = math.tanh %303 : vector<4x8xf32>
      %c28 = arith.constant 28 : index
      %305 = memref.load %arg7[%c28] : memref<32xf32, #tpu.memory_space<smem>>
      %306 = vector.broadcast %305 : f32 to vector<4x8xf32>
      %307 = arith.mulf %306, %304 : vector<4x8xf32>
      %308 = arith.addf %298, %307 : vector<4x8xf32>
      %309 = vector.extract_strided_slice %15 {offsets = [0, 29], sizes = [4, 1], strides = [1, 1]} : vector<4x32xf32> to vector<4x1xf32>
      %310 = vector.extract_strided_slice %17 {offsets = [29, 0], sizes = [1, 8], strides = [1, 1]} : vector<32x8xf32> to vector<1x8xf32>
      %311 = vector.broadcast %309 : vector<4x1xf32> to vector<4x8xf32>
      %312 = vector.broadcast %310 : vector<1x8xf32> to vector<4x8xf32>
      %313 = arith.addf %311, %312 : vector<4x8xf32>
      %314 = math.tanh %313 : vector<4x8xf32>
      %c29 = arith.constant 29 : index
      %315 = memref.load %arg7[%c29] : memref<32xf32, #tpu.memory_space<smem>>
      %316 = vector.broadcast %315 : f32 to vector<4x8xf32>
      %317 = arith.mulf %316, %314 : vector<4x8xf32>
      %318 = arith.addf %308, %317 : vector<4x8xf32>
      %319 = vector.extract_strided_slice %15 {offsets = [0, 30], sizes = [4, 1], strides = [1, 1]} : vector<4x32xf32> to vector<4x1xf32>
      %320 = vector.extract_strided_slice %17 {offsets = [30, 0], sizes = [1, 8], strides = [1, 1]} : vector<32x8xf32> to vector<1x8xf32>
      %321 = vector.broadcast %319 : vector<4x1xf32> to vector<4x8xf32>
      %322 = vector.broadcast %320 : vector<1x8xf32> to vector<4x8xf32>
      %323 = arith.addf %321, %322 : vector<4x8xf32>
      %324 = math.tanh %323 : vector<4x8xf32>
      %c30 = arith.constant 30 : index
      %325 = memref.load %arg7[%c30] : memref<32xf32, #tpu.memory_space<smem>>
      %326 = vector.broadcast %325 : f32 to vector<4x8xf32>
      %327 = arith.mulf %326, %324 : vector<4x8xf32>
      %328 = arith.addf %318, %327 : vector<4x8xf32>
      %329 = vector.extract_strided_slice %15 {offsets = [0, 31], sizes = [4, 1], strides = [1, 1]} : vector<4x32xf32> to vector<4x1xf32>
      %330 = vector.extract_strided_slice %17 {offsets = [31, 0], sizes = [1, 8], strides = [1, 1]} : vector<32x8xf32> to vector<1x8xf32>
      %331 = vector.broadcast %329 : vector<4x1xf32> to vector<4x8xf32>
      %332 = vector.broadcast %330 : vector<1x8xf32> to vector<4x8xf32>
      %333 = arith.addf %331, %332 : vector<4x8xf32>
      %334 = math.tanh %333 : vector<4x8xf32>
      %c31 = arith.constant 31 : index
      %335 = memref.load %arg7[%c31] : memref<32xf32, #tpu.memory_space<smem>>
      %336 = vector.broadcast %335 : f32 to vector<4x8xf32>
      %337 = arith.mulf %336, %334 : vector<4x8xf32>
      %338 = arith.addf %328, %337 : vector<4x8xf32>
      %c8_i32_11 = arith.constant 8 : i32
      %339 = arith.muli %arg2, %c8_i32_11 : i32
      %340 = tpu.iota {dimensions = array<i32: 1>} : vector<4x8xi32>
      %341 = vector.broadcast %339 : i32 to vector<4x8xi32>
      %342 = arith.addi %341, %340 : vector<4x8xi32>
      %343 = vector.broadcast %1 : i32 to vector<4x8xi32>
      %344 = arith.cmpi slt, %342, %343 : vector<4x8xi32>
      %cst_12 = arith.constant -1.000000e+06 : f32
      %345 = vector.broadcast %cst_12 : f32 to vector<4x8xf32>
      %346 = arith.select %344, %338, %345 : vector<4x8xi1>, vector<4x8xf32>
      %c0_13 = arith.constant 0 : index
      %c0_14 = arith.constant 0 : index
      %347 = vector.load %arg9[%c0_13, %c0_14] : memref<4x1xf32, #tpu.memory_space<vmem>>, vector<4x1xf32>
      %cst_15 = arith.constant dense<0xFF800000> : vector<4xf32>
      %348 = vector.multi_reduction <maximumf>, %346, %cst_15 [1] : vector<4x8xf32> to vector<4xf32>
      %349 = vector.shape_cast %348 : vector<4xf32> to vector<4x1xf32>
      %350 = arith.maximumf %347, %349 : vector<4x1xf32>
      %351 = arith.subf %347, %350 : vector<4x1xf32>
      %352 = math.exp %351 : vector<4x1xf32>
      %353 = vector.broadcast %350 : vector<4x1xf32> to vector<4x8xf32>
      %354 = arith.subf %346, %353 : vector<4x8xf32>
      %355 = math.exp %354 : vector<4x8xf32>
      %c0_16 = arith.constant 0 : index
      %c0_17 = arith.constant 0 : index
      %356 = vector.load %arg10[%c0_16, %c0_17] : memref<4x1xf32, #tpu.memory_space<vmem>>, vector<4x1xf32>
      %357 = arith.mulf %352, %356 : vector<4x1xf32>
      %cst_18 = arith.constant dense<0.000000e+00> : vector<4xf32>
      %358 = vector.multi_reduction <add>, %355, %cst_18 [1] : vector<4x8xf32> to vector<4xf32>
      %359 = vector.shape_cast %358 : vector<4xf32> to vector<4x1xf32>
      %360 = arith.addf %357, %359 : vector<4x1xf32>
      %c0_19 = arith.constant 0 : index
      %c0_20 = arith.constant 0 : index
      %361 = vector.load %arg10[%c0_19, %c0_20] : memref<4x1xf32, #tpu.memory_space<vmem>>, vector<4x1xf32>
      tpu.vector_store %arg10[%c0_19, %c0_20], %360 {strides = array<i32>} : memref<4x1xf32, #tpu.memory_space<vmem>>, vector<4x1xf32>,
      %c0_21 = arith.constant 0 : index
      %c0_22 = arith.constant 0 : index
      %362 = vector.load %arg11[%c0_21, %c0_22] : memref<4x128xf32, #tpu.memory_space<vmem>>, vector<4x128xf32>
      %363 = vector.broadcast %352 : vector<4x1xf32> to vector<4x128xf32>
      %364 = arith.mulf %363, %362 : vector<4x128xf32>
      %c0_23 = arith.constant 0 : index
      %c0_24 = arith.constant 0 : index
      %c0_25 = arith.constant 0 : index
      %365 = vector.load %arg6[%c0_23, %c0_24, %c0_25] : memref<1x8x128xf32, #tpu.memory_space<vmem>>, vector<1x8x128xf32>
      %366 = vector.shape_cast %365 : vector<1x8x128xf32> to vector<8x128xf32>
      %cst_26 = arith.constant dense<0.000000e+00> : vector<4x128xf32>
      %367 = tpu.matmul %355, %366, %cst_26 {dimension_numbers = #tpu.dot_dimension_numbers<[1], [0], [0], [1], [0, 0, 1, 1], [], []>} : vector<4x8xf32>, vector<8x128xf32>, vector<4x128xf32> -> vector<4x128xf32>
      %368 = arith.addf %364, %367 : vector<4x128xf32>
      %c0_27 = arith.constant 0 : index
      %c0_28 = arith.constant 0 : index
      %369 = vector.load %arg11[%c0_27, %c0_28] : memref<4x128xf32, #tpu.memory_space<vmem>>, vector<4x128xf32>
      tpu.vector_store %arg11[%c0_27, %c0_28], %368 {strides = array<i32>} : memref<4x128xf32, #tpu.memory_space<vmem>>, vector<4x128xf32>,
      %c0_29 = arith.constant 0 : index
      %c0_30 = arith.constant 0 : index
      %370 = vector.load %arg9[%c0_29, %c0_30] : memref<4x1xf32, #tpu.memory_space<vmem>>, vector<4x1xf32>
      tpu.vector_store %arg9[%c0_29, %c0_30], %350 {strides = array<i32>} : memref<4x1xf32, #tpu.memory_space<vmem>>, vector<4x1xf32>,
    } else {
    }
    %c0_i32_3 = arith.constant 0 : i32
    %11 = arith.cmpi eq, %arg2, %c0_i32_3 : i32
    %12 = arith.extui %11 : i1 to i32
    %c0_i32_4 = arith.constant 0 : i32
    %13 = arith.cmpi ne, %12, %c0_i32_4 : i32
    scf.if %13 {
      %c0 = arith.constant 0 : index
      %c0_5 = arith.constant 0 : index
      %14 = vector.load %arg10[%c0, %c0_5] : memref<4x1xf32, #tpu.memory_space<vmem>>, vector<4x1xf32>
      %15 = tpu.reciprocal %14 {approx = true} : vector<4x1xf32> -> vector<4x1xf32>
      %16 = arith.mulf %14, %15 : vector<4x1xf32>
      %cst = arith.constant 2.000000e+00 : f32
      %17 = vector.broadcast %cst : f32 to vector<4x1xf32>
      %18 = arith.subf %17, %16 : vector<4x1xf32>
      %19 = arith.mulf %15, %18 : vector<4x1xf32>
      %c0_6 = arith.constant 0 : index
      %c0_7 = arith.constant 0 : index
      %20 = vector.load %arg11[%c0_6, %c0_7] : memref<4x128xf32, #tpu.memory_space<vmem>>, vector<4x128xf32>
      %21 = vector.broadcast %19 : vector<4x1xf32> to vector<4x128xf32>
      %22 = arith.mulf %20, %21 : vector<4x128xf32>
      %c0_8 = arith.constant 0 : index
      %c0_9 = arith.constant 0 : index
      %c0_10 = arith.constant 0 : index
      %23 = vector.load %arg8[%c0_8, %c0_9, %c0_10] : memref<1x4x128xf32, #tpu.memory_space<vmem>>, vector<1x4x128xf32>
      %24 = vector.shape_cast %23 : vector<1x4x128xf32> to vector<4x128xf32>
      %25 = vector.shape_cast %22 : vector<4x128xf32> to vector<1x4x128xf32>
      tpu.vector_store %arg8[%c0_8, %c0_9, %c0_10], %25 {strides = array<i32>} : memref<1x4x128xf32, #tpu.memory_space<vmem>>, vector<1x4x128xf32>,
    } else {
    }
    return
  }
  func.func @transform_0(%arg0: i32, %arg1: i32, %arg2: i32, %arg3: memref<2xi32, #tpu.memory_space<smem>>) -> (i32, i32, i32) {
    %c0_i32 = arith.constant 0 : i32
    %c0_i32_0 = arith.constant 0 : i32
    return %arg0, %arg1, %c0_i32 : i32, i32, i32
  }
  func.func @transform_1(%arg0: i32, %arg1: i32, %arg2: i32, %arg3: memref<2xi32, #tpu.memory_space<smem>>) -> (i32, i32, i32) {
    %c0_i32 = arith.constant 0 : i32
    %c0_i32_0 = arith.constant 0 : i32
    return %arg0, %c0_i32, %arg2 : i32, i32, i32
  }
  func.func @transform_2(%arg0: i32, %arg1: i32, %arg2: i32, %arg3: memref<2xi32, #tpu.memory_space<smem>>) -> (i32, i32, i32) {
    %c0_i32 = arith.constant 0 : i32
    %c0_i32_0 = arith.constant 0 : i32
    return %arg0, %arg2, %c0_i32 : i32, i32, i32
  }
  func.func @transform_3(%arg0: i32, %arg1: i32, %arg2: i32, %arg3: memref<2xi32, #tpu.memory_space<smem>>) -> i32 {
    %c0_i32 = arith.constant 0 : i32
    %c0_i32_0 = arith.constant 0 : i32
    return %c0_i32 : i32
  }
  func.func @transform_4(%arg0: i32, %arg1: i32, %arg2: i32, %arg3: memref<2xi32, #tpu.memory_space<smem>>) -> (i32, i32, i32) {
    %c0_i32 = arith.constant 0 : i32
    %c0_i32_0 = arith.constant 0 : i32
    return %arg0, %arg1, %c0_i32 : i32, i32, i32
  }
}

</mosaic_0001>

<bundles_post_ra>
// kernel: additive_attention.1
= control target key start
LH: loop header
LB: loop body
LE: loop exit
PB: predicated region body
PF: predicated region fallthrough
CT: control target
= control target key end

     0   :  { %s1833_s0 = inlined_call_operand.vmem [shape: s32[2], index: 0, kind: input, shape index: {}]   ;;  %s1834_s1 = inlined_call_operand.vmem [shape: f32[2,4,32], index: 1, kind: input, shape index: {}]   ;;  %s1835_s2 = inlined_call_operand.vmem [shape: f32[2,32,8], index: 2, kind: input, shape index: {}]   ;;  %s1836_s3 = inlined_call_operand.vmem [shape: f32[2,8,128], index: 3, kind: input, shape index: {}]   ;;  %s1837_s4 = inlined_call_operand.vmem [shape: f32[32], index: 4, kind: input, shape index: {}]   ;;  %s1838_s5 = inlined_call_operand.hbm [shape: f32[2,4,128], index: 5, kind: output, shape index: {}]  }
   0x1   :  { %s10_s20 = sshll.u32 %s1833_s0, 4  ;;  %s11_s20 = int_to_ptr.vmem [resolvable:$true] %s10_s20 }
   0x2   :  { %s1308_s21 = scalar_lea.vmem %s11_s20, 16  ;;  %p1313_p1 = scmp.lt.s32.totalorder %s11_s20, %s11_s20 }
   0x3   :  { %p1309_p0 = scmp.ne.s32.totalorder %s11_s20, %s1308_s21  ;;  %p1314_p2 = scmp.lt.s32.totalorder %s1308_s21, %s1308_s21 }
   0x5   :  { %p1315_p3 = por %p1314_p2, %p1313_p1 }
   0x7   :  { %p1316_p4 = pnand %p1315_p3, %p1309_p0 }
   0x9   :  { %1319 = shalt.err (!%p1316_p4)  }
   0xa   :  { %s1421_s22 = smov [#allocation6]  }
   0xb   :  { %13 = dma.vmem_to_smem %s11_s20, 16, %s1421_s22, [#allocation5] }
   0xc   :  { %1387 = dma.done.wait [#allocation5], 16 }
   0xd   :  { %1388 = vsyncadd [#allocation5], 4294967280 }
   0xe   :  { %15 = sfence }
   0xf   :  { %16 = vsyncpa [#allocation9], 0 }
  0x10   :  { %17 = vsyncpa [#allocation8], 0 }
  0x11   :  { %19 = vsyncpa [#allocation8 + $0x1], 0  ;;  %s1494_s23 = smov 0   ;;  %s1496_s24 = smov 0  }
  0x12   :  { %s1498_s0 = smov 0   ;;  %s1500_s25 = smov 0  }
  0x13   :  { %s1502_s26 = smov 0   ;;  %s1504_s27 = smov 0  }
  0x14 LB: > { %s1042_s28 = sadd.s32 4294967295, %s1419_s27   ;;  %s1043_s29 = sadd.s32 4294967294, %s1419_s27   ;;  %s1419_s27 = sphi %s1504_s27, %s25_s27   ;;  %s1415_s26 = sphi %s1502_s26, %s1849_s26   ;;  %s1411_s25 = sphi %s1500_s25, %s1848_s25   ;;  %s1407_s0 = sphi %s1498_s0, %s1847_s0   ;;  %s1403_s24 = sphi %s1496_s24, %s1846_s24   ;;  %s1399_s23 = sphi %s1494_s23, %s1845_s23  }
  0x15   : > { %s44_s30 = sadd.s32 1, %s1415_s26  ;;  %s158_s6 = sadd.s32 1, %s1407_s0 }
  0x16   : > { %p46_p5 = scmp.ge.s32.totalorder %s44_s30, 2  ;;  %p168_p6 = scmp.ne.s32.totalorder %s1407_s0, %s1403_s24 }
  0x17   : > { %p169_p7 = scmp.eq.s32.totalorder %s1042_s28, 1  ;;  %p174_p8 = scmp.ne.s32.totalorder %s1403_s24, %s1399_s23 }
  0x18   : > { %s1851_s30 = smov (%p46_p5, %s44_s30), 0  ;;  %p175_p10 = scmp.eq.s32.totalorder %s1043_s29, 1 }
  0x19   : > { %p1534_p9 = por %p169_p7, %p168_p6  ;;  %s153_s8 = ssub.s32 %s1415_s26, %s1851_s30 }
  0x1a   : > { %p1044_p11 = scmp.ge.s32.totalorder %s1419_s27, 1  ;;  %p156_p12 = scmp.eq.s32.totalorder %s153_s8, 0 }
  0x1b   : > { %p1541_p13 = por %p175_p10, %p174_p8  ;;  %p182_p0 = scmp.lt.s32.totalorder %s1419_s27, 3 }
  0x1c   : > { %s1547_s10 = scalar_select %p156_p12, %s1407_s0, %s158_s6  }
  0x1d   : > { %p1549_p1 = pnand %p1044_p11, %p182_p0  ;;  %p1553_p2 = scmp.eq.s32.totalorder %s1042_s28, 0 }
  0x1e   : > { %s195_s15 = sshll.u32 %s1837_s4, 4  ;;  %s196_s15 = int_to_ptr.vmem [resolvable:$true] %s195_s15 }
  0x1f   : > { %p1105_p3 = pneg %p1549_p1  ;;  %s1320_s16 = scalar_lea.vmem %s196_s15, 16 }
  0x20   : > { %p1321_p5 = scmp.ne.s32.totalorder %s196_s15, %s1320_s16  ;;  %p1328_p10 = scmp.lt.s32.totalorder %s196_s15, %s196_s15 }
  0x21   : > { %p1106_p4 = pnand %p1553_p2, %p1105_p3  ;;  %p1329_p11 = scmp.lt.s32.totalorder %s1320_s16, %s1320_s16 }
  0x23   : > { %p1322_p6 = pneg %p1106_p4  ;;  %p1330_p12 = por %p1329_p11, %p1328_p10 }
  0x25   : > { %p1323_p7 = pnand %p1322_p6, %p1321_p5 }
  0x27   : > { %p1324_p8 = pneg %p1323_p7 }
  0x29   : > { %p1331_p0 = pnand %p1330_p12, %p1324_p8 }
  0x2b   : > { %1334 = shalt.err (!%p1331_p0)
}
  0x2c   : > { %s1422_s17 = smov [#allocation7]   ;;  %239 = sbr.rel (%p1549_p1) target bundleno = 978 (0x3d2), region = 36 }
  0x2d   : > { %1108 = dma.vmem_to_smem (!%p1106_p4), %s196_s15, 16, %s1422_s17, [#allocation9]  }
  0x33   : > { %1390 = dma.done.wait (%p1553_p2), [#allocation9], 16  }
  0x34   : > { %1392 = vsyncadd (%p1553_p2), [#allocation9], 4294967280 }
  0x35   : > { %245 = sfence }
  0x36   : > { %s1839_s18 = sand.u32 1, %s1403_s24   ;;  %p283_p3 = scmp.lt.s32.totalorder %s1411_s25, 1  ;;  %vm310_vm0 = vcmask 3072   ;;  %v1423_v0 = vmov -inf   ;;  %v1424_v1 = vmov 0.0  }
  0x37   : > { %s1574_s19 = sshll.u32 %s1839_s18, 2  ;;  %s1577_s20 = sld [smem:[#allocation6 + %s1411_s25]]  ;;  %311 = vst.msk [vmem:[#allocation2] sm:$0xf] %vm310_vm0, %v1423_v0  ;;  %312 = vst.msk [vmem:[#allocation3] sm:$0xf] %vm310_vm0, %v1424_v1 }
  0x38   : > { %313 = vst [vmem:[#allocation4] sm:$0xf] %v1424_v1  ;;  %s284_s21 = scalar_select %p283_p3, %s1411_s25, 1 }
  0x39   : > { %s282_s18 = scalar_lea.vmem [#allocation10], %s1574_s19 }
  0x3a   : > { %s1050_s22 = sshll.u32 %s284_s21, 2  ;;  %s1091_s28 = sshll.u32 %s284_s21, 5 }
  0x3b   : > { %s289_s8 = scalar_lea.vmem %s1834_s1, %s1050_s22  ;;  %s1588_s13 = scalar_lea.vmem %s1835_s2, %s1091_s28 }
  0x3c   : > { %s1053_s14 = sshll.u32 %s284_s21, 3 }
  0x3d   : > { %p1054_p1 = scmp.gt.s32.totalorder %s1577_s20, 0  ;;  %s1594_s17 = scalar_lea.vmem %s1836_s3, %s1053_s14 }
  0x3e   : > { %p316_p2 = scmp.eq.s32.totalorder %s1577_s20, 0 }
  0x40   : > { %p317_p4 = por %p1054_p1, %p316_p2 }
  0x41   : > { %v1598_v2 = vld [vmem:[%s289_s8] sm:$0xf] (%p317_p4)  ;;  %v1425_v3 = vmov (%p317_p4), 2   ;;  %v1426_v4 = vmov (%p317_p4), 0   ;;  %v1427_v5 = vmov (%p317_p4), 3   ;;  %v1428_v6 = vmov (%p317_p4), 1  }
  0x42   : > { %320 = sbr.rel (!%p317_p4) target bundleno = 816 (0x330), region = 48  ;;  %1205 = vset.pattern.permute.xlu1 (%p317_p4), %v1425_v3  ;;  %1203 = vset.pattern.permute.xlu0 (%p317_p4), %v1426_v4  ;;  %v1429_v7 = vmov (%p317_p4), 4   ;;  %v1430_v8 = vmov (%p317_p4), 5   ;;  %v1431_v9 = vmov (%p317_p4), 6   ;;  %v1432_v10 = vmov (%p317_p4), 8   ;;  %v322_v38 = vld [vmem:[%s1588_s13] sm:$0xff] (%p317_p4) }
  0x43   : > { %356 = vperm.xlu1 (%p317_p4), %1205, %v1598_v2   ;;  %328 = vperm.xlu0 (%p317_p4), %1203, %v1598_v2   ;;  %v1433_v11 = vmov (%p317_p4), 7   ;;  %v1434_v12 = vmov (%p317_p4), 11   ;;  %v1435_v13 = vmov (%p317_p4), 9   ;;  %v1436_v14 = vmov (%p317_p4), 14   ;;  %s1653_s21 = sld [smem:[#allocation7]] (%p317_p4)  ;;  %s1659_s22 = sld [smem:[#allocation7 + $0x1]] (%p317_p4) }
  0x44   : > { %v1437_v15 = vmov (%p317_p4), 10   ;;  %v1438_v16 = vmov (%p317_p4), 17   ;;  %v1439_v17 = vmov (%p317_p4), 12   ;;  %v1440_v18 = vmov (%p317_p4), 20   ;;  %s1661_s28 = sld [smem:[#allocation7 + $0x2]] (%p317_p4)  ;;  %v1664_v63 = vld [vmem:[%s1588_s13 + $0x8] sm:$0xff] (%p317_p4) }
  0x45   : > { %v1441_v19 = vmov (%p317_p4), 13   ;;  %v1442_v20 = vmov (%p317_p4), 23   ;;  %v1443_v21 = vmov (%p317_p4), 15   ;;  %v1444_v22 = vmov (%p317_p4), 26   ;;  %s1667_s29 = sld [smem:[#allocation7 + $0x3]] (%p317_p4)  ;;  %s1669_s6 = sld [smem:[#allocation7 + $0x4]] (%p317_p4) }
  0x46   : > { %v1445_v23 = vmov (%p317_p4), 16   ;;  %v1446_v24 = vmov (%p317_p4), 29   ;;  %v1447_v25 = vmov (%p317_p4), 18   ;;  %v1448_v26 = vmov (%p317_p4), 19   ;;  %s1676_s8 = sld [smem:[#allocation7 + $0x5]] (%p317_p4)  ;;  %s1681_s11 = sld [smem:[#allocation7 + $0x6]] (%p317_p4) }
  0x47   : > { %1206 = vset.pattern.permute.xlu1 (%p317_p4), %v1427_v5  ;;  %1204 = vset.pattern.permute.xlu0 (%p317_p4), %v1428_v6  ;;  %v1449_v27 = vmov (%p317_p4), 21   ;;  %v1450_v28 = vmov (%p317_p4), 22   ;;  %v1451_v29 = vmov (%p317_p4), 24   ;;  %v1452_v30 = vmov (%p317_p4), 25   ;;  %s1688_s12 = sld [smem:[#allocation7 + $0x7]] (%p317_p4)  ;;  %s1692_s14 = sld [smem:[#allocation7 + $0x8]] (%p317_p4) }
  0x48   : > { %370 = vperm.xlu1 (%p317_p4), %1206, %v1598_v2   ;;  %342 = vperm.xlu0 (%p317_p4), %1204, %v1598_v2   ;;  %v1453_v31 = vmov (%p317_p4), 27   ;;  %v1454_v32 = vmov (%p317_p4), 28   ;;  %v1455_v33 = vmov (%p317_p4), 30   ;;  %v1456_v34 = vmov (%p317_p4), 31   ;;  %s1063_s15 = sld [smem:[#allocation7 + $0x9]] (%p317_p4)  ;;  %s1701_s16 = sld [smem:[#allocation7 + $0xa]] (%p317_p4) }
  0x49   : > { %v331_v35 = vlaneseq  ;;  %vm783_vm2 = vcmask 60416   ;;  %vm1458_vm3 = vmmov 0   ;;  %vm815_vm4 = vcmask 64512  }
  0x4b   : > { %v332_v36 = vshrl.u32 %v331_v35, 7 }
  0x4c   : > { %1207 = vset.pattern.permute.xlu1 %v1429_v7  ;;  %1208 = vset.pattern.permute.xlu0 %v1430_v8  ;;  %v352_v8 = vstv %s1659_s22  ;;  %s1066_s22 = sld [smem:[#allocation7 + $0xc]] }
  0x4d   : > { %384 = vperm.xlu1 %1207, %v1598_v2   ;;  %398 = vperm.xlu0 %1208, %v1598_v2   ;;  %v1636_v37 = vsub.s32 0, %v332_v36  ;;  %v1639_v39 = vsub.s32 2, %v332_v36  ;;  %v1642_v41 = vsub.s32 1, %v332_v36  ;;  %v1644_v42 = vsub.s32 3, %v332_v36 }
  0x4e   : > { %v1649_v49 = vsub.s32 4, %v332_v36  ;;  %v1651_v50 = vsub.s32 5, %v332_v36  ;;  %v1657_v58 = vsub.s32 6, %v332_v36  ;;  %v1671_v1 = vsub.s32 7, %v332_v36 }
  0x4f   : > { %v334_v40 = vrot.slane %v322_v38, %v1636_v37  ;;  %v362_v43 = vrot.slane %v322_v38, %v1639_v39  ;;  %v348_v47 = vrot.slane %v322_v38, %v1642_v41  ;;  %v376_v48 = vrot.slane %v322_v38, %v1644_v42 }
  0x50   : > { %v390_v56 = vrot.slane %v322_v38, %v1649_v49  ;;  %v404_v57 = vrot.slane %v322_v38, %v1651_v50  ;;  %v418_v0 = vrot.slane %v322_v38, %v1657_v58 }
  0x51   : > { %1209 = vset.pattern.permute.xlu1 %v1431_v9  ;;  %1211 = vset.pattern.permute.xlu0 %v1432_v10  ;;  %v432_v9 = vrot.slane %v322_v38, %v1671_v1  ;;  %v422_v38 = vstv %s1681_s11  ;;  %s1730_s11 = sld [smem:[#allocation7 + $0x11]] }
  0x52   : > { %412 = vperm.xlu1 %1209, %v1598_v2   ;;  %440 = vperm.xlu0 %1211, %v1598_v2  }
  0x56   : > { %1210 = vset.pattern.permute.xlu1 %v1433_v11  ;;  %1214 = vset.pattern.permute.xlu0 %v1434_v12 }
  0x57   : > { %426 = vperm.xlu1 %1210, %v1598_v2   ;;  %482 = vperm.xlu0 %1214, %v1598_v2  }
  0x5b   : > { %1212 = vset.pattern.permute.xlu1 %v1435_v13  ;;  %1217 = vset.pattern.permute.xlu0 %v1436_v14  ;;  %v366_v14 = vstv %s1661_s28  ;;  %s1713_s28 = sld [smem:[#allocation7 + $0xd]] }
  0x5c   : > { %454 = vperm.xlu1 %1212, %v1598_v2   ;;  %524 = vperm.xlu0 %1217, %v1598_v2  }
  0x60   : > { %1213 = vset.pattern.permute.xlu1 %v1437_v15  ;;  %1220 = vset.pattern.permute.xlu0 %v1438_v16 }
  0x61   : > { %468 = vperm.xlu1 %1213, %v1598_v2   ;;  %566 = vperm.xlu0 %1220, %v1598_v2  }
  0x65   : > { %1215 = vset.pattern.permute.xlu1 %v1439_v17  ;;  %1223 = vset.pattern.permute.xlu0 %v1440_v18  ;;  %v380_v18 = vstv %s1667_s29  ;;  %s1720_s29 = sld [smem:[#allocation7 + $0xe]] }
  0x66   : > { %496 = vperm.xlu1 %1215, %v1598_v2   ;;  %608 = vperm.xlu0 %1223, %v1598_v2  }
  0x6a   : > { %1216 = vset.pattern.permute.xlu1 %v1441_v19  ;;  %1226 = vset.pattern.permute.xlu0 %v1442_v20  ;;  %v394_v19 = vstv %s1669_s6  ;;  %s1069_s6 = sld [smem:[#allocation7 + $0xf]] }
  0x6b   : > { %510 = vperm.xlu1 %1216, %v1598_v2   ;;  %650 = vperm.xlu0 %1226, %v1598_v2  }
  0x6f   : > { %1218 = vset.pattern.permute.xlu1 %v1443_v21  ;;  %1229 = vset.pattern.permute.xlu0 %v1444_v22 }
  0x70   : > { %538 = vperm.xlu1 %1218, %v1598_v2   ;;  %692 = vperm.xlu0 %1229, %v1598_v2  }
  0x74   : > { %1219 = vset.pattern.permute.xlu1 %v1445_v23  ;;  %1232 = vset.pattern.permute.xlu0 %v1446_v24  ;;  %v460_v23 = vrot.slane %v1664_v63, %v1642_v41 }
  0x75   : > { %552 = vperm.xlu1 %1219, %v1598_v2   ;;  %734 = vperm.xlu0 %1232, %v1598_v2  }
  0x79   : > { %1221 = vset.pattern.permute.xlu1 %v1447_v25  ;;  %1236 = vset.pattern.permute.xlu0 %v1426_v4  ;;  %v408_v25 = vstv %s1676_s8  ;;  %s1070_s8 = sld [smem:[#allocation7 + $0x10]] }
  0x7a   : > { %580 = vperm.xlu1 %1221, %v1598_v2  }
  0x7e   : > { %1222 = vset.pattern.permute.xlu1 %v1448_v26 }
  0x7f   : > { %594 = vperm.xlu1 %1222, %v1598_v2  }
  0x83   : > { %1224 = vset.pattern.permute.xlu1 %v1449_v27 }
  0x84   : > { %622 = vperm.xlu1 %1224, %v1598_v2  }
  0x88   : > { %1225 = vset.pattern.permute.xlu1 %v1450_v28 }
  0x89   : > { %636 = vperm.xlu1 %1225, %v1598_v2  }
  0x8d   : > { %1227 = vset.pattern.permute.xlu1 %v1451_v29 }
  0x8e   : > { %664 = vperm.xlu1 %1227, %v1598_v2  }
  0x92   : > { %1228 = vset.pattern.permute.xlu1 %v1452_v30  ;;  %v488_v30 = vrot.slane %v1664_v63, %v1644_v42 }
  0x93   : > { %678 = vperm.xlu1 %1228, %v1598_v2  }
  0x97   : > { %1230 = vset.pattern.permute.xlu1 %v1453_v31 }
  0x98   : > { %706 = vperm.xlu1 %1230, %v1598_v2  }
  0x9c   : > { %1231 = vset.pattern.permute.xlu1 %v1454_v32 }
  0x9d   : > { %720 = vperm.xlu1 %1231, %v1598_v2  }
  0xa1   : > { %1233 = vset.pattern.permute.xlu1 %v1455_v33 }
  0xa2   : > { %748 = vperm.xlu1 %1233, %v1598_v2  }
  0xa6   : > { %1234 = vset.pattern.permute.xlu1 %v1456_v34 }
  0xa7   : > { %762 = vperm.xlu1 %1234, %v1598_v2   ;;  %v446_v2 = vrot.slane %v1664_v63, %v1636_v37 }
  0xab   : > { %1235 = vset.pattern.permute.xlu1 %v1426_v4  ;;  %v338_v4 = vstv %s1653_s21  ;;  %s1705_s21 = sld [smem:[#allocation7 + $0xb]] }
  0xc2   : > { %v357_v44 = vpop.permute.xlu1 %356  ;;  %v329_v45 = vpop.permute.xlu0 %328 }
  0xc3   : > { %v335_v46 = vadd.f32 %v334_v40, %v329_v45  ;;  %v363_v51 = vadd.f32 %v362_v43, %v357_v44  ;;  %v474_v40 = vrot.slane %v1664_v63, %v1639_v39 }
  0xc5   : > { %1237 = vtanh.f32 %v335_v46 }
  0xc6   : > { %1239 = vtanh.f32 %v363_v51  ;;  %v436_v51 = vstv %s1688_s12  ;;  %s1072_s12 = sld [smem:[#allocation7 + $0x12]] }
  0xc7   : > { %v371_v52 = vpop.permute.xlu1 %370  ;;  %v343_v53 = vpop.permute.xlu0 %342 }
  0xc8   : > { %v349_v54 = vadd.f32 %v348_v47, %v343_v53  ;;  %v377_v55 = vadd.f32 %v376_v48, %v371_v52 }
  0xca   : > { %1241 = vtanh.f32 %v349_v54  ;;  %v502_v54 = vrot.slane %v1664_v63, %v1649_v49 }
  0xcb   : > { %1243 = vtanh.f32 %v377_v55 }
  0xcc   : > { %v385_v59 = vpop.permute.xlu1 %384  ;;  %v399_v60 = vpop.permute.xlu0 %398 }
  0xcd   : > { %v391_v61 = vadd.f32 %v390_v56, %v385_v59  ;;  %v405_v62 = vadd.f32 %v404_v57, %v399_v60  ;;  %v450_v56 = vstv %s1692_s14  ;;  %v530_v60 = vrot.slane %v1664_v63, %v1657_v58  ;;  %s1737_s14 = sld [smem:[#allocation7 + $0x13]] }
  0xcf   : > { %1245 = vtanh.f32 %v391_v61  ;;  %v1238_v3 = vpop.eup %1237 }
  0xd0   : > { %1247 = vtanh.f32 %v405_v62  ;;  %v1240_v10 = vpop.eup %1239  ;;  %v339_v11 = vmul.f32 %v1238_v3, %v338_v4  ;;  %v464_v4 = vstv %s1063_s15  ;;  %s1741_s15 = sld [smem:[#allocation7 + $0x14]] }
  0xd1   : > { %v413_v5 = vpop.permute.xlu1 %412  ;;  %v441_v6 = vpop.permute.xlu0 %440  ;;  %v367_v21 = vmul.f32 %v1240_v10, %v366_v14  ;;  %v544_v14 = vrot.slane %v1664_v63, %v1671_v1 }
  0xd2   : > { %v419_v7 = vadd.f32 %v418_v0, %v413_v5  ;;  %v447_v12 = vadd.f32 %v446_v2, %v441_v6  ;;  %v516_v5 = vrot.slane %v1664_v63, %v1651_v50 }
  0xd4   : > { %1249 = vtanh.f32 %v419_v7  ;;  %v1242_v13 = vpop.eup %1241 }
  0xd5   : > { %v353_v15 = vmul.f32 %v1242_v13, %v352_v8  ;;  %v1244_v17 = vpop.eup %1243  ;;  %1251 = vtanh.f32 %v447_v12 }
  0xd6   : > { %v427_v16 = vpop.permute.xlu1 %426  ;;  %v381_v27 = vmul.f32 %v1244_v17, %v380_v18  ;;  %v483_v32 = vpop.permute.xlu0 %482  ;;  %v1716_v17 = vld [vmem:[%s1588_s13 + $0x10] sm:$0xff] }
  0xd7   : > { %v433_v20 = vadd.f32 %v432_v9, %v427_v16  ;;  %v354_v22 = vadd.f32 %v353_v15, %v339_v11  ;;  %v489_v45 = vadd.f32 %v488_v30, %v483_v32  ;;  %v478_v11 = vstv %s1701_s16  ;;  %s1075_s16 = sld [smem:[#allocation7 + $0x15]] }
  0xd8   : > { %v492_v16 = vstv %s1705_s21  ;;  %v520_v32 = vstv %s1713_s28  ;;  %s1076_s21 = sld [smem:[#allocation7 + $0x16]]  ;;  %s1079_s28 = sld [smem:[#allocation7 + $0x19]] }
  0xd9   : > { %v1246_v24 = vpop.eup %1245  ;;  %1253 = vtanh.f32 %v433_v20  ;;  %v368_v28 = vadd.f32 %v367_v21, %v354_v22  ;;  %v572_v20 = vrot.slane %v1716_v17, %v1642_v41 }
  0xda   : > { %v1248_v26 = vpop.eup %1247  ;;  %v395_v29 = vmul.f32 %v1246_v24, %v394_v19 }
  0xdb   : > { %v455_v31 = vpop.permute.xlu1 %454  ;;  %v382_v33 = vadd.f32 %v381_v27, %v368_v28  ;;  %v409_v34 = vmul.f32 %v1248_v26, %v408_v25  ;;  %v525_v62 = vpop.permute.xlu0 %524  ;;  %v506_v25 = vstv %s1066_s22  ;;  %v558_v26 = vrot.slane %v1716_v17, %v1636_v37  ;;  %s1078_s22 = sld [smem:[#allocation7 + $0x18]] }
  0xdc   : > { %v461_v36 = vadd.f32 %v460_v23, %v455_v31  ;;  %v531_v7 = vadd.f32 %v530_v60, %v525_v62 }
  0xdd   : > { %v396_v44 = vadd.f32 %v395_v29, %v382_v33 }
  0xde   : > { %v1250_v43 = vpop.eup %1249  ;;  %1255 = vtanh.f32 %v461_v36  ;;  %v586_v36 = vrot.slane %v1716_v17, %v1639_v39 }
  0xdf   : > { %v410_v46 = vadd.f32 %v409_v34, %v396_v44  ;;  %v423_v47 = vmul.f32 %v1250_v43, %v422_v38  ;;  %v1252_v53 = vpop.eup %1251  ;;  %1257 = vtanh.f32 %v489_v45  ;;  %v614_v45 = vrot.slane %v1716_v17, %v1649_v49 }
  0xe0   : > { %v469_v48 = vpop.permute.xlu1 %468  ;;  %v451_v2 = vmul.f32 %v1252_v53, %v450_v56  ;;  %v567_v22 = vpop.permute.xlu0 %566  ;;  %v548_v53 = vstv %s1069_s6  ;;  %s1081_s6 = sld [smem:[#allocation7 + $0x1b]] }
  0xe1   : > { %v475_v52 = vadd.f32 %v474_v40, %v469_v48  ;;  %v424_v57 = vadd.f32 %v423_v47, %v410_v46  ;;  %v573_v28 = vadd.f32 %v572_v20, %v567_v22  ;;  %v534_v40 = vstv %s1720_s29  ;;  %s1080_s29 = sld [smem:[#allocation7 + $0x1a]] }
  0xe2   : > { %v604_v22 = vstv %s1737_s14  ;;  %s1085_s14 = sld [smem:[#allocation7 + $0x1f]] }
  0xe3   : > { %v1254_v55 = vpop.eup %1253  ;;  %1259 = vtanh.f32 %v475_v52 }
  0xe4   : > { %v437_v59 = vmul.f32 %v1254_v55, %v436_v51 }
  0xe5   : > { %v497_v61 = vpop.permute.xlu1 %496  ;;  %v609_v47 = vpop.permute.xlu0 %608 }
  0xe6   : > { %v438_v0 = vadd.f32 %v437_v59, %v424_v57  ;;  %v503_v3 = vadd.f32 %v502_v54, %v497_v61  ;;  %v600_v54 = vrot.slane %v1716_v17, %v1644_v42  ;;  %v615_v56 = vadd.f32 %v614_v45, %v609_v47 }
  0xe7   : > { %v562_v61 = vstv %s1070_s8  ;;  %s1082_s8 = sld [smem:[#allocation7 + $0x1c]] }
  0xe8   : > { %v1256_v6 = vpop.eup %1255  ;;  %1261 = vtanh.f32 %v503_v3  ;;  %v452_v8 = vadd.f32 %v451_v2, %v438_v0  ;;  %v628_v2 = vrot.slane %v1716_v17, %v1651_v50 }
  0xe9   : > { %v465_v9 = vmul.f32 %v1256_v6, %v464_v4  ;;  %v1258_v13 = vpop.eup %1257  ;;  %1263 = vtanh.f32 %v531_v7  ;;  %v576_v4 = vstv %s1730_s11  ;;  %v656_v7 = vrot.slane %v1716_v17, %v1671_v1  ;;  %s1083_s11 = sld [smem:[#allocation7 + $0x1d]] }
  0xea   : > { %v511_v10 = vpop.permute.xlu1 %510  ;;  %v493_v24 = vmul.f32 %v1258_v13, %v492_v16  ;;  %v590_v13 = vstv %s1072_s12  ;;  %s1084_s12 = sld [smem:[#allocation7 + $0x1e]] }
  0xeb   : > { %v517_v12 = vadd.f32 %v516_v5, %v511_v10  ;;  %v466_v18 = vadd.f32 %v465_v9, %v452_v8  ;;  %v651_v9 = vpop.permute.xlu0 %650 }
  0xec   : > { %v657_v16 = vadd.f32 %v656_v7, %v651_v9 }
  0xed   : > { %v1260_v15 = vpop.eup %1259  ;;  %1265 = vtanh.f32 %v517_v12 }
  0xee   : > { %v479_v19 = vmul.f32 %v1260_v15, %v478_v11 }
  0xef   : > { %v539_v21 = vpop.permute.xlu1 %538 }
  0xf0   : > { %v480_v23 = vadd.f32 %v479_v19, %v466_v18  ;;  %v545_v63 = vadd.f32 %v544_v14, %v539_v21  ;;  %v642_v14 = vrot.slane %v1716_v17, %v1657_v58  ;;  %v1746_v18 = vld [vmem:[%s1588_s13 + $0x18] sm:$0xff]  ;;  %s1754_s13 = sld [smem:[#allocation7 + $0x17]] }
  0xf1   : > { %v712_v47 = vrot.slane %v1746_v18, %v1644_v42 }
  0xf2   : > { %v1262_v27 = vpop.eup %1261  ;;  %1267 = vtanh.f32 %v545_v63  ;;  %v494_v29 = vadd.f32 %v493_v24, %v480_v23  ;;  %v670_v63 = vrot.slane %v1746_v18, %v1636_v37  ;;  %v684_v37 = vrot.slane %v1746_v18, %v1642_v41 }
  0xf3   : > { %v507_v30 = vmul.f32 %v1262_v27, %v506_v25  ;;  %v1264_v34 = vpop.eup %1263  ;;  %1269 = vtanh.f32 %v573_v28  ;;  %v698_v28 = vrot.slane %v1746_v18, %v1639_v39  ;;  %v646_v39 = vstv %s1076_s21 }
  0xf4   : > { %v553_v31 = vpop.permute.xlu1 %552  ;;  %v535_v51 = vmul.f32 %v1264_v34, %v534_v40  ;;  %v632_v34 = vstv %s1075_s16 }
  0xf5   : > { %v559_v33 = vadd.f32 %v558_v26, %v553_v31  ;;  %v508_v43 = vadd.f32 %v507_v30, %v494_v29  ;;  %v618_v26 = vstv %s1741_s15  ;;  %v693_v30 = vpop.permute.xlu0 %692 }
  0xf7   : > { %v1266_v38 = vpop.eup %1265  ;;  %1271 = vtanh.f32 %v559_v33 }
  0xf8   : > { %v521_v44 = vmul.f32 %v1266_v38, %v520_v32  ;;  %v699_v38 = vadd.f32 %v698_v28, %v693_v30  ;;  %v758_v28 = vstv %s1084_s12  ;;  %v772_v30 = vstv %s1085_s14 }
  0xf9   : > { %v581_v46 = vpop.permute.xlu1 %580 }
  0xfa   : > { %v522_v48 = vadd.f32 %v521_v44, %v508_v43  ;;  %v587_v52 = vadd.f32 %v586_v36, %v581_v46 }
  0xfc   : > { %v1268_v55 = vpop.eup %1267  ;;  %1273 = vtanh.f32 %v587_v52  ;;  %v536_v57 = vadd.f32 %v535_v51, %v522_v48  ;;  %v660_v51 = vstv %s1754_s13 }
  0xfd   : > { %v549_v59 = vmul.f32 %v1268_v55, %v548_v53  ;;  %v1270_v0 = vpop.eup %1269  ;;  %1275 = vtanh.f32 %v615_v56  ;;  %v740_v53 = vrot.slane %v1746_v18, %v1651_v50  ;;  %v735_v55 = vpop.permute.xlu0 %734 }
  0xfe   : > { %v595_v60 = vpop.permute.xlu1 %594  ;;  %v577_v11 = vmul.f32 %v1270_v0, %v576_v4  ;;  %v688_v4 = vstv %s1079_s28 }
  0xff   : > { %v601_v62 = vadd.f32 %v600_v54, %v595_v60  ;;  %v550_v5 = vadd.f32 %v549_v59, %v536_v57  ;;  %v674_v60 = vstv %s1078_s22 }
 0x101   : > { %v1272_v3 = vpop.eup %1271  ;;  %1277 = vtanh.f32 %v601_v62  ;;  %v741_v62 = vadd.f32 %v740_v53, %v735_v55  ;;  %v799_v55 = vld [vmem:[#allocation3] sm:$0xf] }
 0x102   : > { %v563_v6 = vmul.f32 %v1272_v3, %v562_v61  ;;  %v726_v61 = vrot.slane %v1746_v18, %v1649_v49 }
 0x103   : > { %v623_v8 = vpop.permute.xlu1 %622 }
 0x104   : > { %v564_v10 = vadd.f32 %v563_v6, %v550_v5  ;;  %v629_v12 = vadd.f32 %v628_v2, %v623_v8  ;;  %v754_v6 = vrot.slane %v1746_v18, %v1657_v58  ;;  %v702_v8 = vstv %s1080_s29 }
 0x106   : > { %v1274_v15 = vpop.eup %1273  ;;  %1279 = vtanh.f32 %v629_v12  ;;  %v578_v19 = vadd.f32 %v577_v11, %v564_v10 }
 0x107   : > { %v591_v20 = vmul.f32 %v1274_v15, %v590_v13  ;;  %v1276_v24 = vpop.eup %1275  ;;  %1281 = vtanh.f32 %v657_v16  ;;  %v768_v15 = vrot.slane %v1746_v18, %v1671_v1 }
 0x108   : > { %v637_v21 = vpop.permute.xlu1 %636  ;;  %v619_v32 = vmul.f32 %v1276_v24, %v618_v26 }
 0x109   : > { %v643_v23 = vadd.f32 %v642_v14, %v637_v21  ;;  %v592_v17 = vadd.f32 %v591_v20, %v578_v19  ;;  %v716_v14 = vstv %s1081_s6 }
 0x10b   : > { %v1278_v25 = vpop.eup %1277  ;;  %1283 = vtanh.f32 %v643_v23 }
 0x10c   : > { %v605_v27 = vmul.f32 %v1278_v25, %v604_v22  ;;  %v730_v22 = vstv %s1082_s8 }
 0x10d   : > { %v665_v29 = vpop.permute.xlu1 %664 }
 0x10e   : > { %v606_v31 = vadd.f32 %v605_v27, %v592_v17  ;;  %v671_v33 = vadd.f32 %v670_v63, %v665_v29  ;;  %v744_v63 = vstv %s1083_s11 }
 0x110   : > { %v1280_v36 = vpop.eup %1279  ;;  %1285 = vtanh.f32 %v671_v33  ;;  %v620_v40 = vadd.f32 %v619_v32, %v606_v31  ;;  %v776_v31 = vand.u32 127, %v331_v35  ;;  %v779_v32 = vstv %s1577_s20 }
 0x111   : > { %v633_v43 = vmul.f32 %v1280_v36, %v632_v34  ;;  %v1282_v46 = vpop.eup %1281  ;;  %1287 = vtanh.f32 %v699_v38 }
 0x112   : > { %v679_v44 = vpop.permute.xlu1 %678  ;;  %v661_v57 = vmul.f32 %v1282_v46, %v660_v51  ;;  %vm780_vm1 = vcmp.lt.s32.totalorder %v776_v31, %v779_v32  ;;  %v814_v46 = vld [vmem:[%s1594_s17] sm:$0xff] }
 0x113   : > { %v685_v45 = vadd.f32 %v684_v37, %v679_v44  ;;  %v634_v52 = vadd.f32 %v633_v43, %v620_v40  ;;  %v782_v43 = vld [vmem:[#allocation2] sm:$0xf] }
 0x115   : > { %v1284_v48 = vpop.eup %1283  ;;  %1289 = vtanh.f32 %v685_v45 }
 0x116   : > { %v647_v41 = vmul.f32 %v1284_v48, %v646_v39 }
 0x117   : > { %v707_v54 = vpop.permute.xlu1 %706 }
 0x118   : > { %v648_v56 = vadd.f32 %v647_v41, %v634_v52  ;;  %v713_v59 = vadd.f32 %v712_v47, %v707_v54  ;;  %v1457_v47 = vmov 0.0  }
 0x119   : > { %1094 = vmatprep.subr.mxu0 %v1457_v47  ;;  %1096 = vmatprep.mubr.msk.f32.mxu0 %vm1458_vm3, %v1457_v47 }
 0x11a   : > { %v1286_v42 = vpop.eup %1285  ;;  %1291 = vtanh.f32 %v713_v59  ;;  %v662_v0 = vadd.f32 %v661_v57, %v648_v56  ;;  %1095 = vmatpush3.msra.mxu0 %v814_v46 }
 0x11b   : > { %v675_v2 = vmul.f32 %v1286_v42, %v674_v60  ;;  %v1288_v50 = vpop.eup %1287  ;;  %1293 = vtanh.f32 %v741_v62  ;;  %v807_v60 = vld [vmem:[#allocation4] sm:$0xf] }
 0x11c   : > { %v721_v3 = vpop.permute.xlu1 %720  ;;  %v703_v12 = vmul.f32 %v1288_v50, %v702_v8 }
 0x11d   : > { %v727_v5 = vadd.f32 %v726_v61, %v721_v3  ;;  %v676_v9 = vadd.f32 %v675_v2, %v662_v0 }
 0x11f   : > { %v1290_v7 = vpop.eup %1289  ;;  %1295 = vtanh.f32 %v727_v5 }
 0x120   : > { %v689_v49 = vmul.f32 %v1290_v7, %v688_v4 }
 0x121   : > { %v749_v10 = vpop.permute.xlu1 %748 }
 0x122   : > { %v690_v11 = vadd.f32 %v689_v49, %v676_v9  ;;  %v755_v13 = vadd.f32 %v754_v6, %v749_v10 }
 0x124   : > { %v1292_v16 = vpop.eup %1291  ;;  %1297 = vtanh.f32 %v755_v13  ;;  %v704_v20 = vadd.f32 %v703_v12, %v690_v11 }
 0x125   : > { %v717_v19 = vmul.f32 %v1292_v16, %v716_v14  ;;  %v1294_v23 = vpop.eup %1293 }
 0x126   : > { %v763_v58 = vpop.permute.xlu1 %762  ;;  %v745_v27 = vmul.f32 %v1294_v23, %v744_v63 }
 0x127   : > { %v769_v21 = vadd.f32 %v768_v15, %v763_v58  ;;  %v718_v25 = vadd.f32 %v717_v19, %v704_v20 }
 0x129   : > { %v1296_v24 = vpop.eup %1295  ;;  %1299 = vtanh.f32 %v769_v21 }
 0x12a   : > { %v731_v26 = vmul.f32 %v1296_v24, %v730_v22 }
 0x12c   : > { %v732_v17 = vadd.f32 %v731_v26, %v718_v25 }
 0x12e   : > { %v1298_v1 = vpop.eup %1297  ;;  %v746_v18 = vadd.f32 %v745_v27, %v732_v17 }
 0x12f   : > { %v759_v29 = vmul.f32 %v1298_v1, %v758_v28 }
 0x131   : > { %v760_v34 = vadd.f32 %v759_v29, %v746_v18 }
 0x133   : > { %v1300_v33 = vpop.eup %1299 }
 0x134   : > { %v773_v37 = vmul.f32 %v1300_v33, %v772_v30 }
 0x136   : > { %v774_v36 = vadd.f32 %v773_v37, %v760_v34 }
 0x138   : > { %v781_v38 = vsel %vm780_vm1, %v774_v36, -1000000.0 }
 0x139   : > { %v784_v40 = vsel %vm783_vm2, %v781_v38, -inf }
 0x13a   : > { %785 = vmax.xlane.f32.xlu0 %v784_v40 }
 0x1c7   : > { %v786_v44 = vpop.xlane.xlu0 %785 }
 0x1c8   : > { %v787_v39 = vmax.f32 %v782_v43, %v786_v44 }
 0x1ca   : > { %v788_v45 = vsub.f32 %v782_v43, %v787_v39  ;;  %891 = vst.msk [vmem:[#allocation2] sm:$0xf] %vm310_vm0, %v787_v39  ;;  %793 = vperm.xlu1 %1235, %v787_v39  }
 0x1cc   : > { %v789_v35 = vmul.f32 1.442695, %v788_v45 }
 0x1ce   : > { %1301 = vpow2.f32 %v789_v35 }
 0x1d8   : > { %v1302_v48 = vpop.eup %1301 }
 0x1d9   : > { %810 = vperm.xlu0 %1236, %v1302_v48   ;;  %v800_v56 = vmul.f32 %v1302_v48, %v799_v55 }
 0x249   : > { %v794_v51 = vpop.permute.xlu1 %793 }
 0x24a   : > { %v796_v52 = vsub.f32 %v781_v38, %v794_v51 }
 0x24c   : > { %v797_v41 = vmul.f32 1.442695, %v796_v52 }
 0x24e   : > { %1303 = vpow2.f32 %v797_v41 }
 0x258   : > { %v1304_v53 = vpop.eup %1303  ;;  %v811_v61 = vpop.permute.xlu0 %810 }
 0x259   : > { %1097 = vmatmul.mubr.msk.f32.vlgmr.msra.gmra.mrb[0].mxu0 %vm815_vm4, %v1304_v53  ;;  %v801_v54 = vsel %vm783_vm2, %v1304_v53, 0.0  ;;  %v813_v42 = vmul.f32 %v811_v61, %v807_v60 }
 0x25a   : > { %802 = vadd.xlane.f32.xlu1 %v801_v54 }
 0x2e7   : > { %v803_v57 = vpop.xlane.xlu1 %802 }
 0x2e8   : > { %v804_v59 = vadd.f32 %v803_v57, %v800_v56 }
 0x2ea   : > { %806 = vst.msk [vmem:[#allocation3] sm:$0xf] %vm310_vm0, %v804_v59 }
 0x32c   : > { %v885_v62 = vpop.f32.mrb[0].mxu0 }
 0x32d   : > { %v889_v0 = vadd.f32 %v885_v62, %v813_v42  ;;  %v1098_v2 = vpop.f32.mrb[1].mxu0 }
 0x32f   : > { %890 = vst [vmem:[#allocation4] sm:$0xf] %v889_v0 }
 0x330 PF: > { %v895_v3 = vld [vmem:[#allocation3] sm:$0xf]  ;;  %v1459_v4 = vmov 0   ;;  %s1088_s20 = sshll.u32 %s1411_s25, 6  ;;  %s923_s17 = sshll.u32 %s282_s18, 4  ;;  %s1784_s17 = int_to_ptr.vmem [resolvable:$true] %s923_s17 }
 0x331   : > { %1305 = vset.pattern.permute.xlu0 %v1459_v4  ;;  %1306 = vrcp.f32 %v895_v3  ;;  %s1782_s21 = scalar_lea.hbm %s1838_s5, %s1088_s20  ;;  %s1844_s13 = sand.u32 1, %s1403_s24  }
 0x332   : > { %s909_s22 = scalar_lea.sflag [#allocation8], %s1844_s13  ;;  %s1335_s28 = scalar_lea.vmem %s1784_s17, 64 }
 0x333   : > { %p1336_p5 = scmp.ne.s32.totalorder %s1784_s17, %s1335_s28  ;;  %s1460_s25 = smov [#allocation10]  }
 0x334   : > { %s1339_s29 = sshll.u32 %s1460_s25, 4  ;;  %s1340_s29 = int_to_ptr.vmem [resolvable:$false] %s1339_s29 }
 0x335   : > { %p1337_p6 = pnand %p1336_p5, %p1534_p9  ;;  %s1341_s6 = scalar_lea.vmem %s1340_s29, 128 }
 0x336   : > { %v900_v8 = vld [vmem:[#allocation4] sm:$0xf]  ;;  %p1342_p8 = scmp.lt.s32.totalorder %s1784_s17, %s1340_s29  ;;  %p1343_p10 = scmp.lt.s32.totalorder %s1341_s6, %s1335_s28 }
 0x337   : > { %p1338_p7 = pneg %p1337_p6 }
 0x338   : > { %p1344_p11 = por %p1343_p10, %p1342_p8 }
 0x33a   : > { %p1345_p12 = pnand %p1344_p11, %p1338_p7 }
 0x33b   : > { %v1307_v5 = vpop.eup %1306 }
 0x33c   : > { %v897_v50 = vmul.f32 %v1307_v5, %v895_v3 }
 0x33e   : > { %v898_v6 = vsub.f32 2.0, %v897_v50 }
 0x340   : > { %v899_v7 = vmul.f32 %v1307_v5, %v898_v6 }
 0x342   : > { %903 = vperm.xlu0 %1305, %v899_v7  }
 0x3c1   : > { %v904_v9 = vpop.permute.xlu0 %903 }
 0x3c2   : > { %v906_v49 = vmul.f32 %v904_v9, %v900_v8 }
 0x3c4   : > { %907 = vst [vmem:[%s282_s18] sm:$0xf] %v906_v49 }
 0x3c5   : > { %1348 = shalt.err (!%p1345_p12)
}
 0x3c6   : > { %s1349_s18 = scalar_lea.hbm %s1782_s21, 64  ;;  %s1353_s11 = scalar_lea.hbm %s1838_s5, 128 }
 0x3c7   : > { %p1350_p0 = scmp.ne.s32.totalorder %s1782_s21, %s1349_s18  ;;  %p1354_p2 = scmp.lt.u32.totalorder %s1782_s21, %s1838_s5 }
 0x3c8   : > { %p1355_p4 = scmp.lt.u32.totalorder %s1353_s11, %s1349_s18  ;;  %p1357_p6 = scmp.lt.u32.totalorder %s1349_s18, %s1782_s21 }
 0x3c9   : > { %p1351_p3 = pnand %p1350_p0, %p1534_p9 }
 0x3ca   : > { %p1356_p5 = por %p1355_p4, %p1354_p2 }
 0x3cb   : > { %p1352_p1 = pneg %p1351_p3 }
 0x3cc   : > { %p1358_p7 = por %p1357_p6, %p1356_p5 }
 0x3ce   : > { %p1359_p8 = pnand %p1358_p7, %p1352_p1 }
 0x3d0   : > { %1362 = shalt.err (!%p1359_p8)
}
 0x3d1   : > { %1103 = dma.vmem_to_hbm [thread:$0]  (%p1534_p9), %s1784_s17, 64, %s1782_s21, %s909_s22  }
 0x3d2 PF: > { %p1115_p10 = scmp.ge.s32.totalorder %s1419_s27, 2  ;;  %s935_s20 = sand.u32 1, %s1399_s23  }
 0x3d3   : > { %s936_s15 = scalar_lea.sflag [#allocation8], %s935_s20 }
 0x3d4   : > { %p1110_p11 = pnand %p1115_p10, %p1541_p13 }
 0x3d6   : > { %1394 = dma.done.wait (!%p1110_p11), %s936_s15, 64  }
 0x3d7   : > { %1396 = vsyncadd (!%p1110_p11), %s936_s15, 4294967232  ;;  %s25_s27 = sadd.s32 1, %s1419_s27   ;;  %s1845_s23 = smov %s1403_s24 }
 0x3d8   : > { %p22_p12 = scmp.ge.s32.totalorder %s25_s27, 4   ;;  %s1846_s24 = smov %s1407_s0 }
 0x3d9   : > { %s1847_s0 = smov %s1547_s10  ;;  %s1848_s25 = smov %s1415_s26 }
 0x3da   : > { %s1849_s26 = smov %s1851_s30  ;;  %24 = sbr.rel (!%p22_p12) target bundleno = 20 (0x14), region = 94 }
 0x3e1   :  { %941 = vsyncpa [#allocation8], 1 }
 0x3e2   :  { %943 = vsyncpa [#allocation8 + $0x1], 1 }
 0x3e3   :  { %944 = vsyncpa [#allocation9], 1 }
 0x3e4   :  { %946 = vsyncpa [#allocation9 + $0x1], 1 }

</bundles_post_ra>
